<compile_context>
chip_gen: v6e
topology: v6e:2x2x1
jax: 0.10.0
libtpu: 0.0.40
codegen_flags: <defaults>
</compile_context>

<pallas_src>
import math
from functools import partial

import jax
import jax.numpy as jnp
from jax.experimental import pallas as pl
from jax.experimental.pallas import tpu as pltpu


def adaptive_pool_matrix(c_in: int, c_out: int) -> jnp.ndarray:
    """P[c_in, c_out] with x @ P == F.adaptive_avg_pool1d(x, c_out) over the last axis."""
    P = [[0.0] * c_out for _ in range(c_in)]
    for j in range(c_out):
        start = (j * c_in) // c_out
        end = -((-(j + 1) * c_in) // c_out)      # ceil((j+1)*c_in/c_out)
        w = 1.0 / (end - start)
        for i in range(start, end):
            P[i][j] = w
    return jnp.array(P, dtype=jnp.float32)


def _round_up(x: int, m: int) -> int:
    return (x + m - 1) // m * m


def _vmem_bytes(bt, *, C, HW, Cout, HoWo, Kdim, Nc, XPW):
    x_blk = 2 * bt * C * HW * 2          # x block, bf16, double-buffered
    o_blk = 2 * bt * Cout * HoWo * 4     # output block, f32, double-buffered
    w_blk = 2 * Cout * Kdim * 2          # fused weights, bf16, double-buffered
    b_blk = 2 * Cout * 128 * 4           # bias tile (lane-padded)
    xp = C * XPW * 2                     # padded-image scratch, bf16
    rhs = Kdim * bt * Nc * 2             # tap-stacked RHS scratch, bf16
    return x_blk + o_blk + w_blk + b_blk + xp + rhs


def _pick_batch_tile(B, budget_bytes, vmem_fn):
    """Largest divisor of B that fits the VMEM budget and keeps >= 2 grid steps."""
    best = 1
    for bt in range(1, B + 1):
        if B % bt:
            continue
        if B >= 2 and (B // bt) < 2:
            continue                      # keep both v7x TensorCores busy
        if vmem_fn(bt) <= budget_bytes:
            best = bt
    return best


def hsconv_kernel(x_ref, w_ref, b_ref, o_ref, xp_ref, rhs_ref, *,
                  H, W, Wp, KH, KW, Ho, Wo, stride, pad, Nc):
    # x_ref:   (bt, C, H*W)          raw cube, channel-major flat spatial, bf16
    # w_ref:   (Cout, KH*KW*C)       pool-fused, tap-stacked conv weights, bf16
    # b_ref:   (Cout, 1)             bias, f32
    # o_ref:   (bt, Cout, Ho*Wo)     cropped + strided conv output, f32
    # xp_ref:  VMEM (C, XPW)         zero-padded flat image (+halo/align), bf16
    # rhs_ref: VMEM (KH*KW*C, bt*Nc) tap-stacked matmul RHS, bf16
    bt, C, _ = x_ref.shape
    XPW = xp_ref.shape[1]

    # --- zero only the lanes the interior copies never overwrite -------------
    # (padding border, inter-row gaps, halo / 128-lane alignment tail).  Done
    # every grid step: cheap, and correct even when a megacore "parallel"
    # split means this core never runs program_id(0) == 0.
    if pad > 0:
        xp_ref[:, 0:pad * Wp + pad] = jnp.zeros((C, pad * Wp + pad), xp_ref.dtype)
        for h in range(H - 1):
            g = (h + pad) * Wp + pad + W
            xp_ref[:, g:g + 2 * pad] = jnp.zeros((C, 2 * pad), xp_ref.dtype)
        t0 = (H - 1 + pad) * Wp + pad + W
        xp_ref[:, t0:XPW] = jnp.zeros((C, XPW - t0), xp_ref.dtype)
    else:
        xp_ref[:, H * W:XPW] = jnp.zeros((C, XPW - H * W), xp_ref.dtype)

    # --- stage bt images into the shared tap-stacked RHS ---------------------
    for b in range(bt):
        # in-kernel spatial zero padding: (C, H*W) -> interior of (C, Hp*Wp)
        if pad == 0:
            xp_ref[:, 0:H * W] = x_ref[b]
        else:
            for h in range(H):
                d = (h + pad) * Wp + pad
                xp_ref[:, d:d + W] = x_ref[b, :, h * W:(h + 1) * W]
        # TODO(synk): for large H*W, DMA the rows straight from HBM into the xp
        # interior (memory_space=pl.ANY + make_async_copy) to drop this
        # VMEM->VMEM pass and the double-buffered x input block entirely.

        # KH*KW lane-shifted copies of the padded image become the contraction
        # rows of this image's RHS column block (K = KH*KW*C).
        for kh in range(KH):
            for kw in range(KW):
                t = kh * KW + kw
                s = kh * Wp + kw
                rhs_ref[t * C:(t + 1) * C, b * Nc:(b + 1) * Nc] = \
                    xp_ref[:, s:s + Nc]

    # --- one long MXU matmul for all taps and all bt images ------------------
    out_all = jnp.dot(w_ref[...], rhs_ref[...],
                      preferred_element_type=jnp.float32)   # (Cout, bt*Nc) f32

    # --- in-kernel crop + stride subsample + bias, straight to the output ----
    bias = b_ref[...]                                        # (Cout, 1) f32
    for b in range(bt):
        for ho in range(Ho):
            src = b * Nc + ho * stride * Wp
            row = out_all[:, src:src + (Wo - 1) * stride + 1:stride]  # (Cout, Wo)
            o_ref[b, :, ho * Wo:(ho + 1) * Wo] = (row + bias).astype(o_ref.dtype)
    # TODO(synk): for stride > 1, build the RHS only at strided output columns
    # to avoid the stride^2 over-compute on the MXU.


def hs_conv_plain(x_nchw, wavelengths, weight, bias, *, in_channels, stride, padding):
    """x_nchw: [B,C,H,W]; weight: [Cout,Cin,KH,KW] (PyTorch OIHW); bias: [Cout] or None."""
    del wavelengths          # pooled by the module but unused by forward's output
    B, C, H, W = x_nchw.shape
    Cout, Cin, KH, KW = weight.shape
    assert Cin == in_channels

    Hp, Wp = H + 2 * padding, W + 2 * padding
    Ho = (Hp - KH) // stride + 1
    Wo = (Wp - KW) // stride + 1
    ntot = Hp * Wp
    halo = (KH - 1) * Wp + (KW - 1)
    Nc = _round_up(ntot, 128)            # matmul columns per image (lane-dense)
    XPW = _round_up(halo + Nc, 128)      # padded-image scratch width
    Kdim = KH * KW * C

    # Fold the adaptive-pool matrix into the conv weights (contract over raw C)
    # and stack taps along the contraction, tap-major:
    #   w_stk[o, (kh*KW + kw)*C + c] = sum_i P[c, i] * weight[o, i, kh, kw]
    P = adaptive_pool_matrix(C, Cin)                                    # (C, Cin)
    w_fused = jnp.einsum('ci,oikl->ockl', P, weight.astype(jnp.float32),
                         precision=jax.lax.Precision.HIGHEST)           # (Cout,C,KH,KW)
    w_stk = jnp.transpose(w_fused, (0, 2, 3, 1)).reshape(Cout, Kdim)
    w_stk = w_stk.astype(jnp.bfloat16)                 # bf16 MXU operand
    b2 = bias if bias is not None else jnp.zeros((Cout,), jnp.float32)
    b2 = jnp.asarray(b2, jnp.float32).reshape(Cout, 1)

    # layout-preserving reshape; bf16 halves HBM->VMEM bytes and VMEM footprint
    x_flat = x_nchw.reshape(B, C, H * W).astype(jnp.bfloat16)

    vmem_fn = partial(_vmem_bytes, C=C, HW=H * W, Cout=Cout, HoWo=Ho * Wo,
                      Kdim=Kdim, Nc=Nc, XPW=XPW)
    bt = _pick_batch_tile(B, 40 * 2**20, vmem_fn)
    # TODO(synk): if even bt=1 exceeds the budget (very large C*H*W), add an
    # Ho-tile grid axis with a (KH-1)-row halo and fall back to per-tap
    # slice+add accumulation instead of the tap-stacked RHS.
    vmem_limit = int(min(100 * 2**20, max(32 * 2**20, 2 * vmem_fn(bt))))

    kernel = partial(hsconv_kernel, H=H, W=W, Wp=Wp, KH=KH, KW=KW,
                     Ho=Ho, Wo=Wo, stride=stride, pad=padding, Nc=Nc)

    out_flat = pl.pallas_call(
        kernel,
        out_shape=jax.ShapeDtypeStruct((B, Cout, Ho * Wo), jnp.float32),
        grid_spec=pltpu.PrefetchScalarGridSpec(
            num_scalar_prefetch=0,
            grid=(B // bt,),
            in_specs=[
                pl.BlockSpec((bt, C, H * W), lambda i: (i, 0, 0)),
                pl.BlockSpec((Cout, Kdim), lambda i: (0, 0)),
                pl.BlockSpec((Cout, 1), lambda i: (0, 0)),
            ],
            out_specs=pl.BlockSpec((bt, Cout, Ho * Wo), lambda i: (i, 0, 0)),
            scratch_shapes=[
                pltpu.VMEM((C, XPW), jnp.bfloat16),
                pltpu.VMEM((Kdim, bt * Nc), jnp.bfloat16),
            ],
        ),
        compiler_params=pltpu.CompilerParams(
            dimension_semantics=("parallel",),
            vmem_limit_bytes=vmem_limit),
    )(x_flat, w_stk, b2)

    # already NCHW-flat and already cropped/strided: only a free reshape left
    return out_flat.reshape(B, Cout, Ho, Wo)


if __name__ == "__main__":
    key = jax.random.PRNGKey(0)
    B, C, H, W = 2, 8, 16, 16            # raw hyperspectral cube (NCHW)
    in_channels, out_channels = 4, 8
    KH, KW = 3, 3
    stride, padding = 1, 1

    kx, kw_, kb, kwl = jax.random.split(key, 4)
    x = jax.random.normal(kx, (B, C, H, W), jnp.float32)
    wavelengths = jax.random.uniform(kwl, (B, C), jnp.float32, 400.0, 1000.0)

    # deterministic Conv2d parameter init (kaiming-uniform-style bounds)
    fan_in = in_channels * KH * KW
    wbound = math.sqrt(6.0 / fan_in)
    weight = jax.random.uniform(kw_, (out_channels, in_channels, KH, KW),
                                jnp.float32, -wbound, wbound)
    bbound = 1.0 / math.sqrt(fan_in)
    bias = jax.random.uniform(kb, (out_channels,), jnp.float32, -bbound, bbound)

    out = hs_conv_plain(x, wavelengths, weight, bias,
                        in_channels=in_channels, stride=stride, padding=padding)
    jax.block_until_ready(out)

    # reference 1: exact module semantics in f32 (adaptive channel pool -> Conv2d);
    # tolerance sized for the intended bf16 operand quantization in the kernel.
    P = adaptive_pool_matrix(C, in_channels)
    x_pooled = jnp.einsum('bchw,cd->bdhw', x, P,
                          precision=jax.lax.Precision.HIGHEST)
    ref_f32 = jax.lax.conv_general_dilated(
        x_pooled, weight, window_strides=(stride, stride),
        padding=[(padding, padding), (padding, padding)],
        dimension_numbers=('NCHW', 'OIHW', 'NCHW'),
        precision=jax.lax.Precision.HIGHEST) + bias[None, :, None, None]
    assert out.shape == ref_f32.shape, (out.shape, ref_f32.shape)
    assert jnp.allclose(out, ref_f32, atol=3e-2, rtol=3e-2), \
        float(jnp.max(jnp.abs(out - ref_f32)))

    # reference 2: same bf16 operand quantization as the kernel, f32 math —
    # isolates the kernel machinery from the intended bf16 rounding (tight tol).
    w_fused = jnp.einsum('ci,oikl->ockl', P, weight,
                         precision=jax.lax.Precision.HIGHEST)
    xq = x.astype(jnp.bfloat16).astype(jnp.float32)
    wq = w_fused.astype(jnp.bfloat16).astype(jnp.float32)
    ref_q = jax.lax.conv_general_dilated(
        xq, wq, window_strides=(stride, stride),
        padding=[(padding, padding), (padding, padding)],
        dimension_numbers=('NCHW', 'OIHW', 'NCHW'),
        precision=jax.lax.Precision.HIGHEST) + bias[None, :, None, None]
    assert jnp.allclose(out, ref_q, atol=2e-3, rtol=2e-3), \
        float(jnp.max(jnp.abs(out - ref_q)))

    print("KERNEL_OK")
</pallas_src>

<mosaic_0001>
module attributes {stable_mosaic.version = 11 : i64} {
  func.func @hsconv_kernel(%arg0: i32, %arg1: memref<1x8x256xbf16, #tpu.memory_space<vmem>>, %arg2: memref<8x72xbf16, #tpu.memory_space<vmem>>, %arg3: memref<8x1xf32, #tpu.memory_space<vmem>>, %arg4: memref<1x8x256xf32, #tpu.memory_space<vmem>>, %arg5: memref<8x512xbf16, #tpu.memory_space<vmem>>, %arg6: memref<72x384xbf16, #tpu.memory_space<vmem>>) attributes {dimension_semantics = [#tpu.dimension_semantics<parallel>], iteration_bounds = array<i64: 2>, scalar_prefetch = 0 : i64, scratch_operands = 2 : i64, tpu.core_type = #tpu.core_type<tc>, window_params = [{transform_indices = @transform_0, window_bounds = array<i64: 1, 8, 256>}, {pipeline_mode = #tpu.pipeline_mode<synchronous>, transform_indices = @transform_1, window_bounds = array<i64: 8, 72>}, {pipeline_mode = #tpu.pipeline_mode<synchronous>, transform_indices = @transform_2, window_bounds = array<i64: 8, 1>}, {transform_indices = @transform_3, window_bounds = array<i64: 1, 8, 256>}]} {
    %cst = arith.constant 0.000000e+00 : bf16
    %0 = vector.broadcast %cst : bf16 to vector<8x19xbf16>
    %c0 = arith.constant 0 : index
    %c0_0 = arith.constant 0 : index
    %1 = vector.load %arg5[%c0, %c0_0] : memref<8x512xbf16, #tpu.memory_space<vmem>>, vector<8x19xbf16>
    tpu.vector_store %arg5[%c0, %c0_0], %0 {strides = array<i32>} : memref<8x512xbf16, #tpu.memory_space<vmem>>, vector<8x19xbf16>,
    %cst_1 = arith.constant 0.000000e+00 : bf16
    %2 = vector.broadcast %cst_1 : bf16 to vector<8x2xbf16>
    %c0_2 = arith.constant 0 : index
    %c35 = arith.constant 35 : index
    %3 = vector.load %arg5[%c0_2, %c35] : memref<8x512xbf16, #tpu.memory_space<vmem>>, vector<8x2xbf16>
    tpu.vector_store %arg5[%c0_2, %c35], %2 {strides = array<i32>} : memref<8x512xbf16, #tpu.memory_space<vmem>>, vector<8x2xbf16>,
    %cst_3 = arith.constant 0.000000e+00 : bf16
    %4 = vector.broadcast %cst_3 : bf16 to vector<8x2xbf16>
    %c0_4 = arith.constant 0 : index
    %c53 = arith.constant 53 : index
    %5 = vector.load %arg5[%c0_4, %c53] : memref<8x512xbf16, #tpu.memory_space<vmem>>, vector<8x2xbf16>
    tpu.vector_store %arg5[%c0_4, %c53], %4 {strides = array<i32>} : memref<8x512xbf16, #tpu.memory_space<vmem>>, vector<8x2xbf16>,
    %cst_5 = arith.constant 0.000000e+00 : bf16
    %6 = vector.broadcast %cst_5 : bf16 to vector<8x2xbf16>
    %c0_6 = arith.constant 0 : index
    %c71 = arith.constant 71 : index
    %7 = vector.load %arg5[%c0_6, %c71] : memref<8x512xbf16, #tpu.memory_space<vmem>>, vector<8x2xbf16>
    tpu.vector_store %arg5[%c0_6, %c71], %6 {strides = array<i32>} : memref<8x512xbf16, #tpu.memory_space<vmem>>, vector<8x2xbf16>,
    %cst_7 = arith.constant 0.000000e+00 : bf16
    %8 = vector.broadcast %cst_7 : bf16 to vector<8x2xbf16>
    %c0_8 = arith.constant 0 : index
    %c89 = arith.constant 89 : index
    %9 = vector.load %arg5[%c0_8, %c89] : memref<8x512xbf16, #tpu.memory_space<vmem>>, vector<8x2xbf16>
    tpu.vector_store %arg5[%c0_8, %c89], %8 {strides = array<i32>} : memref<8x512xbf16, #tpu.memory_space<vmem>>, vector<8x2xbf16>,
    %cst_9 = arith.constant 0.000000e+00 : bf16
    %10 = vector.broadcast %cst_9 : bf16 to vector<8x2xbf16>
    %c0_10 = arith.constant 0 : index
    %c107 = arith.constant 107 : index
    %11 = vector.load %arg5[%c0_10, %c107] : memref<8x512xbf16, #tpu.memory_space<vmem>>, vector<8x2xbf16>
    tpu.vector_store %arg5[%c0_10, %c107], %10 {strides = array<i32>} : memref<8x512xbf16, #tpu.memory_space<vmem>>, vector<8x2xbf16>,
    %cst_11 = arith.constant 0.000000e+00 : bf16
    %12 = vector.broadcast %cst_11 : bf16 to vector<8x2xbf16>
    %c0_12 = arith.constant 0 : index
    %c125 = arith.constant 125 : index
    %13 = vector.load %arg5[%c0_12, %c125] : memref<8x512xbf16, #tpu.memory_space<vmem>>, vector<8x2xbf16>
    tpu.vector_store %arg5[%c0_12, %c125], %12 {strides = array<i32>} : memref<8x512xbf16, #tpu.memory_space<vmem>>, vector<8x2xbf16>,
    %cst_13 = arith.constant 0.000000e+00 : bf16
    %14 = vector.broadcast %cst_13 : bf16 to vector<8x2xbf16>
    %c0_14 = arith.constant 0 : index
    %c143 = arith.constant 143 : index
    %15 = vector.load %arg5[%c0_14, %c143] : memref<8x512xbf16, #tpu.memory_space<vmem>>, vector<8x2xbf16>
    tpu.vector_store %arg5[%c0_14, %c143], %14 {strides = array<i32>} : memref<8x512xbf16, #tpu.memory_space<vmem>>, vector<8x2xbf16>,
    %cst_15 = arith.constant 0.000000e+00 : bf16
    %16 = vector.broadcast %cst_15 : bf16 to vector<8x2xbf16>
    %c0_16 = arith.constant 0 : index
    %c161 = arith.constant 161 : index
    %17 = vector.load %arg5[%c0_16, %c161] : memref<8x512xbf16, #tpu.memory_space<vmem>>, vector<8x2xbf16>
    tpu.vector_store %arg5[%c0_16, %c161], %16 {strides = array<i32>} : memref<8x512xbf16, #tpu.memory_space<vmem>>, vector<8x2xbf16>,
    %cst_17 = arith.constant 0.000000e+00 : bf16
    %18 = vector.broadcast %cst_17 : bf16 to vector<8x2xbf16>
    %c0_18 = arith.constant 0 : index
    %c179 = arith.constant 179 : index
    %19 = vector.load %arg5[%c0_18, %c179] : memref<8x512xbf16, #tpu.memory_space<vmem>>, vector<8x2xbf16>
    tpu.vector_store %arg5[%c0_18, %c179], %18 {strides = array<i32>} : memref<8x512xbf16, #tpu.memory_space<vmem>>, vector<8x2xbf16>,
    %cst_19 = arith.constant 0.000000e+00 : bf16
    %20 = vector.broadcast %cst_19 : bf16 to vector<8x2xbf16>
    %c0_20 = arith.constant 0 : index
    %c197 = arith.constant 197 : index
    %21 = vector.load %arg5[%c0_20, %c197] : memref<8x512xbf16, #tpu.memory_space<vmem>>, vector<8x2xbf16>
    tpu.vector_store %arg5[%c0_20, %c197], %20 {strides = array<i32>} : memref<8x512xbf16, #tpu.memory_space<vmem>>, vector<8x2xbf16>,
    %cst_21 = arith.constant 0.000000e+00 : bf16
    %22 = vector.broadcast %cst_21 : bf16 to vector<8x2xbf16>
    %c0_22 = arith.constant 0 : index
    %c215 = arith.constant 215 : index
    %23 = vector.load %arg5[%c0_22, %c215] : memref<8x512xbf16, #tpu.memory_space<vmem>>, vector<8x2xbf16>
    tpu.vector_store %arg5[%c0_22, %c215], %22 {strides = array<i32>} : memref<8x512xbf16, #tpu.memory_space<vmem>>, vector<8x2xbf16>,
    %cst_23 = arith.constant 0.000000e+00 : bf16
    %24 = vector.broadcast %cst_23 : bf16 to vector<8x2xbf16>
    %c0_24 = arith.constant 0 : index
    %c233 = arith.constant 233 : index
    %25 = vector.load %arg5[%c0_24, %c233] : memref<8x512xbf16, #tpu.memory_space<vmem>>, vector<8x2xbf16>
    tpu.vector_store %arg5[%c0_24, %c233], %24 {strides = array<i32>} : memref<8x512xbf16, #tpu.memory_space<vmem>>, vector<8x2xbf16>,
    %cst_25 = arith.constant 0.000000e+00 : bf16
    %26 = vector.broadcast %cst_25 : bf16 to vector<8x2xbf16>
    %c0_26 = arith.constant 0 : index
    %c251 = arith.constant 251 : index
    %27 = vector.load %arg5[%c0_26, %c251] : memref<8x512xbf16, #tpu.memory_space<vmem>>, vector<8x2xbf16>
    tpu.vector_store %arg5[%c0_26, %c251], %26 {strides = array<i32>} : memref<8x512xbf16, #tpu.memory_space<vmem>>, vector<8x2xbf16>,
    %cst_27 = arith.constant 0.000000e+00 : bf16
    %28 = vector.broadcast %cst_27 : bf16 to vector<8x2xbf16>
    %c0_28 = arith.constant 0 : index
    %c269 = arith.constant 269 : index
    %29 = vector.load %arg5[%c0_28, %c269] : memref<8x512xbf16, #tpu.memory_space<vmem>>, vector<8x2xbf16>
    tpu.vector_store %arg5[%c0_28, %c269], %28 {strides = array<i32>} : memref<8x512xbf16, #tpu.memory_space<vmem>>, vector<8x2xbf16>,
    %cst_29 = arith.constant 0.000000e+00 : bf16
    %30 = vector.broadcast %cst_29 : bf16 to vector<8x2xbf16>
    %c0_30 = arith.constant 0 : index
    %c287 = arith.constant 287 : index
    %31 = vector.load %arg5[%c0_30, %c287] : memref<8x512xbf16, #tpu.memory_space<vmem>>, vector<8x2xbf16>
    tpu.vector_store %arg5[%c0_30, %c287], %30 {strides = array<i32>} : memref<8x512xbf16, #tpu.memory_space<vmem>>, vector<8x2xbf16>,
    %cst_31 = arith.constant 0.000000e+00 : bf16
    %32 = vector.broadcast %cst_31 : bf16 to vector<8x207xbf16>
    %c0_32 = arith.constant 0 : index
    %c305 = arith.constant 305 : index
    %33 = vector.load %arg5[%c0_32, %c305] : memref<8x512xbf16, #tpu.memory_space<vmem>>, vector<8x207xbf16>
    tpu.vector_store %arg5[%c0_32, %c305], %32 {strides = array<i32>} : memref<8x512xbf16, #tpu.memory_space<vmem>>, vector<8x207xbf16>,
    %c0_33 = arith.constant 0 : index
    %c0_34 = arith.constant 0 : index
    %c0_35 = arith.constant 0 : index
    %34 = vector.load %arg1[%c0_33, %c0_34, %c0_35] : memref<1x8x256xbf16, #tpu.memory_space<vmem>>, vector<1x8x16xbf16>
    %35 = vector.shape_cast %34 : vector<1x8x16xbf16> to vector<8x16xbf16>
    %c0_36 = arith.constant 0 : index
    %c19 = arith.constant 19 : index
    %36 = vector.load %arg5[%c0_36, %c19] : memref<8x512xbf16, #tpu.memory_space<vmem>>, vector<8x16xbf16>
    tpu.vector_store %arg5[%c0_36, %c19], %35 {strides = array<i32>} : memref<8x512xbf16, #tpu.memory_space<vmem>>, vector<8x16xbf16>,
    %c0_37 = arith.constant 0 : index
    %c0_38 = arith.constant 0 : index
    %c16 = arith.constant 16 : index
    %37 = vector.load %arg1[%c0_37, %c0_38, %c16] : memref<1x8x256xbf16, #tpu.memory_space<vmem>>, vector<1x8x16xbf16>
    %38 = vector.shape_cast %37 : vector<1x8x16xbf16> to vector<8x16xbf16>
    %c0_39 = arith.constant 0 : index
    %c37 = arith.constant 37 : index
    %39 = vector.load %arg5[%c0_39, %c37] : memref<8x512xbf16, #tpu.memory_space<vmem>>, vector<8x16xbf16>
    tpu.vector_store %arg5[%c0_39, %c37], %38 {strides = array<i32>} : memref<8x512xbf16, #tpu.memory_space<vmem>>, vector<8x16xbf16>,
    %c0_40 = arith.constant 0 : index
    %c0_41 = arith.constant 0 : index
    %c32 = arith.constant 32 : index
    %40 = vector.load %arg1[%c0_40, %c0_41, %c32] : memref<1x8x256xbf16, #tpu.memory_space<vmem>>, vector<1x8x16xbf16>
    %41 = vector.shape_cast %40 : vector<1x8x16xbf16> to vector<8x16xbf16>
    %c0_42 = arith.constant 0 : index
    %c55 = arith.constant 55 : index
    %42 = vector.load %arg5[%c0_42, %c55] : memref<8x512xbf16, #tpu.memory_space<vmem>>, vector<8x16xbf16>
    tpu.vector_store %arg5[%c0_42, %c55], %41 {strides = array<i32>} : memref<8x512xbf16, #tpu.memory_space<vmem>>, vector<8x16xbf16>,
    %c0_43 = arith.constant 0 : index
    %c0_44 = arith.constant 0 : index
    %c48 = arith.constant 48 : index
    %43 = vector.load %arg1[%c0_43, %c0_44, %c48] : memref<1x8x256xbf16, #tpu.memory_space<vmem>>, vector<1x8x16xbf16>
    %44 = vector.shape_cast %43 : vector<1x8x16xbf16> to vector<8x16xbf16>
    %c0_45 = arith.constant 0 : index
    %c73 = arith.constant 73 : index
    %45 = vector.load %arg5[%c0_45, %c73] : memref<8x512xbf16, #tpu.memory_space<vmem>>, vector<8x16xbf16>
    tpu.vector_store %arg5[%c0_45, %c73], %44 {strides = array<i32>} : memref<8x512xbf16, #tpu.memory_space<vmem>>, vector<8x16xbf16>,
    %c0_46 = arith.constant 0 : index
    %c0_47 = arith.constant 0 : index
    %c64 = arith.constant 64 : index
    %46 = vector.load %arg1[%c0_46, %c0_47, %c64] : memref<1x8x256xbf16, #tpu.memory_space<vmem>>, vector<1x8x16xbf16>
    %47 = vector.shape_cast %46 : vector<1x8x16xbf16> to vector<8x16xbf16>
    %c0_48 = arith.constant 0 : index
    %c91 = arith.constant 91 : index
    %48 = vector.load %arg5[%c0_48, %c91] : memref<8x512xbf16, #tpu.memory_space<vmem>>, vector<8x16xbf16>
    tpu.vector_store %arg5[%c0_48, %c91], %47 {strides = array<i32>} : memref<8x512xbf16, #tpu.memory_space<vmem>>, vector<8x16xbf16>,
    %c0_49 = arith.constant 0 : index
    %c0_50 = arith.constant 0 : index
    %c80 = arith.constant 80 : index
    %49 = vector.load %arg1[%c0_49, %c0_50, %c80] : memref<1x8x256xbf16, #tpu.memory_space<vmem>>, vector<1x8x16xbf16>
    %50 = vector.shape_cast %49 : vector<1x8x16xbf16> to vector<8x16xbf16>
    %c0_51 = arith.constant 0 : index
    %c109 = arith.constant 109 : index
    %51 = vector.load %arg5[%c0_51, %c109] : memref<8x512xbf16, #tpu.memory_space<vmem>>, vector<8x16xbf16>
    tpu.vector_store %arg5[%c0_51, %c109], %50 {strides = array<i32>} : memref<8x512xbf16, #tpu.memory_space<vmem>>, vector<8x16xbf16>,
    %c0_52 = arith.constant 0 : index
    %c0_53 = arith.constant 0 : index
    %c96 = arith.constant 96 : index
    %52 = vector.load %arg1[%c0_52, %c0_53, %c96] : memref<1x8x256xbf16, #tpu.memory_space<vmem>>, vector<1x8x16xbf16>
    %53 = vector.shape_cast %52 : vector<1x8x16xbf16> to vector<8x16xbf16>
    %c0_54 = arith.constant 0 : index
    %c127 = arith.constant 127 : index
    %54 = vector.load %arg5[%c0_54, %c127] : memref<8x512xbf16, #tpu.memory_space<vmem>>, vector<8x16xbf16>
    tpu.vector_store %arg5[%c0_54, %c127], %53 {strides = array<i32>} : memref<8x512xbf16, #tpu.memory_space<vmem>>, vector<8x16xbf16>,
    %c0_55 = arith.constant 0 : index
    %c0_56 = arith.constant 0 : index
    %c112 = arith.constant 112 : index
    %55 = vector.load %arg1[%c0_55, %c0_56, %c112] : memref<1x8x256xbf16, #tpu.memory_space<vmem>>, vector<1x8x16xbf16>
    %56 = vector.shape_cast %55 : vector<1x8x16xbf16> to vector<8x16xbf16>
    %c0_57 = arith.constant 0 : index
    %c145 = arith.constant 145 : index
    %57 = vector.load %arg5[%c0_57, %c145] : memref<8x512xbf16, #tpu.memory_space<vmem>>, vector<8x16xbf16>
    tpu.vector_store %arg5[%c0_57, %c145], %56 {strides = array<i32>} : memref<8x512xbf16, #tpu.memory_space<vmem>>, vector<8x16xbf16>,
    %c0_58 = arith.constant 0 : index
    %c0_59 = arith.constant 0 : index
    %c128 = arith.constant 128 : index
    %58 = vector.load %arg1[%c0_58, %c0_59, %c128] : memref<1x8x256xbf16, #tpu.memory_space<vmem>>, vector<1x8x16xbf16>
    %59 = vector.shape_cast %58 : vector<1x8x16xbf16> to vector<8x16xbf16>
    %c0_60 = arith.constant 0 : index
    %c163 = arith.constant 163 : index
    %60 = vector.load %arg5[%c0_60, %c163] : memref<8x512xbf16, #tpu.memory_space<vmem>>, vector<8x16xbf16>
    tpu.vector_store %arg5[%c0_60, %c163], %59 {strides = array<i32>} : memref<8x512xbf16, #tpu.memory_space<vmem>>, vector<8x16xbf16>,
    %c0_61 = arith.constant 0 : index
    %c0_62 = arith.constant 0 : index
    %c144 = arith.constant 144 : index
    %61 = vector.load %arg1[%c0_61, %c0_62, %c144] : memref<1x8x256xbf16, #tpu.memory_space<vmem>>, vector<1x8x16xbf16>
    %62 = vector.shape_cast %61 : vector<1x8x16xbf16> to vector<8x16xbf16>
    %c0_63 = arith.constant 0 : index
    %c181 = arith.constant 181 : index
    %63 = vector.load %arg5[%c0_63, %c181] : memref<8x512xbf16, #tpu.memory_space<vmem>>, vector<8x16xbf16>
    tpu.vector_store %arg5[%c0_63, %c181], %62 {strides = array<i32>} : memref<8x512xbf16, #tpu.memory_space<vmem>>, vector<8x16xbf16>,
    %c0_64 = arith.constant 0 : index
    %c0_65 = arith.constant 0 : index
    %c160 = arith.constant 160 : index
    %64 = vector.load %arg1[%c0_64, %c0_65, %c160] : memref<1x8x256xbf16, #tpu.memory_space<vmem>>, vector<1x8x16xbf16>
    %65 = vector.shape_cast %64 : vector<1x8x16xbf16> to vector<8x16xbf16>
    %c0_66 = arith.constant 0 : index
    %c199 = arith.constant 199 : index
    %66 = vector.load %arg5[%c0_66, %c199] : memref<8x512xbf16, #tpu.memory_space<vmem>>, vector<8x16xbf16>
    tpu.vector_store %arg5[%c0_66, %c199], %65 {strides = array<i32>} : memref<8x512xbf16, #tpu.memory_space<vmem>>, vector<8x16xbf16>,
    %c0_67 = arith.constant 0 : index
    %c0_68 = arith.constant 0 : index
    %c176 = arith.constant 176 : index
    %67 = vector.load %arg1[%c0_67, %c0_68, %c176] : memref<1x8x256xbf16, #tpu.memory_space<vmem>>, vector<1x8x16xbf16>
    %68 = vector.shape_cast %67 : vector<1x8x16xbf16> to vector<8x16xbf16>
    %c0_69 = arith.constant 0 : index
    %c217 = arith.constant 217 : index
    %69 = vector.load %arg5[%c0_69, %c217] : memref<8x512xbf16, #tpu.memory_space<vmem>>, vector<8x16xbf16>
    tpu.vector_store %arg5[%c0_69, %c217], %68 {strides = array<i32>} : memref<8x512xbf16, #tpu.memory_space<vmem>>, vector<8x16xbf16>,
    %c0_70 = arith.constant 0 : index
    %c0_71 = arith.constant 0 : index
    %c192 = arith.constant 192 : index
    %70 = vector.load %arg1[%c0_70, %c0_71, %c192] : memref<1x8x256xbf16, #tpu.memory_space<vmem>>, vector<1x8x16xbf16>
    %71 = vector.shape_cast %70 : vector<1x8x16xbf16> to vector<8x16xbf16>
    %c0_72 = arith.constant 0 : index
    %c235 = arith.constant 235 : index
    %72 = vector.load %arg5[%c0_72, %c235] : memref<8x512xbf16, #tpu.memory_space<vmem>>, vector<8x16xbf16>
    tpu.vector_store %arg5[%c0_72, %c235], %71 {strides = array<i32>} : memref<8x512xbf16, #tpu.memory_space<vmem>>, vector<8x16xbf16>,
    %c0_73 = arith.constant 0 : index
    %c0_74 = arith.constant 0 : index
    %c208 = arith.constant 208 : index
    %73 = vector.load %arg1[%c0_73, %c0_74, %c208] : memref<1x8x256xbf16, #tpu.memory_space<vmem>>, vector<1x8x16xbf16>
    %74 = vector.shape_cast %73 : vector<1x8x16xbf16> to vector<8x16xbf16>
    %c0_75 = arith.constant 0 : index
    %c253 = arith.constant 253 : index
    %75 = vector.load %arg5[%c0_75, %c253] : memref<8x512xbf16, #tpu.memory_space<vmem>>, vector<8x16xbf16>
    tpu.vector_store %arg5[%c0_75, %c253], %74 {strides = array<i32>} : memref<8x512xbf16, #tpu.memory_space<vmem>>, vector<8x16xbf16>,
    %c0_76 = arith.constant 0 : index
    %c0_77 = arith.constant 0 : index
    %c224 = arith.constant 224 : index
    %76 = vector.load %arg1[%c0_76, %c0_77, %c224] : memref<1x8x256xbf16, #tpu.memory_space<vmem>>, vector<1x8x16xbf16>
    %77 = vector.shape_cast %76 : vector<1x8x16xbf16> to vector<8x16xbf16>
    %c0_78 = arith.constant 0 : index
    %c271 = arith.constant 271 : index
    %78 = vector.load %arg5[%c0_78, %c271] : memref<8x512xbf16, #tpu.memory_space<vmem>>, vector<8x16xbf16>
    tpu.vector_store %arg5[%c0_78, %c271], %77 {strides = array<i32>} : memref<8x512xbf16, #tpu.memory_space<vmem>>, vector<8x16xbf16>,
    %c0_79 = arith.constant 0 : index
    %c0_80 = arith.constant 0 : index
    %c240 = arith.constant 240 : index
    %79 = vector.load %arg1[%c0_79, %c0_80, %c240] : memref<1x8x256xbf16, #tpu.memory_space<vmem>>, vector<1x8x16xbf16>
    %80 = vector.shape_cast %79 : vector<1x8x16xbf16> to vector<8x16xbf16>
    %c0_81 = arith.constant 0 : index
    %c289 = arith.constant 289 : index
    %81 = vector.load %arg5[%c0_81, %c289] : memref<8x512xbf16, #tpu.memory_space<vmem>>, vector<8x16xbf16>
    tpu.vector_store %arg5[%c0_81, %c289], %80 {strides = array<i32>} : memref<8x512xbf16, #tpu.memory_space<vmem>>, vector<8x16xbf16>,
    %c0_82 = arith.constant 0 : index
    %c0_83 = arith.constant 0 : index
    %82 = vector.load %arg5[%c0_82, %c0_83] : memref<8x512xbf16, #tpu.memory_space<vmem>>, vector<8x384xbf16>
    %c0_84 = arith.constant 0 : index
    %c0_85 = arith.constant 0 : index
    %83 = vector.load %arg6[%c0_84, %c0_85] : memref<72x384xbf16, #tpu.memory_space<vmem>>, vector<8x384xbf16>
    tpu.vector_store %arg6[%c0_84, %c0_85], %82 {strides = array<i32>} : memref<72x384xbf16, #tpu.memory_space<vmem>>, vector<8x384xbf16>,
    %c0_86 = arith.constant 0 : index
    %c1 = arith.constant 1 : index
    %84 = vector.load %arg5[%c0_86, %c1] : memref<8x512xbf16, #tpu.memory_space<vmem>>, vector<8x384xbf16>
    %c8 = arith.constant 8 : index
    %c0_87 = arith.constant 0 : index
    %85 = vector.load %arg6[%c8, %c0_87] : memref<72x384xbf16, #tpu.memory_space<vmem>>, vector<8x384xbf16>
    tpu.vector_store %arg6[%c8, %c0_87], %84 {strides = array<i32>} : memref<72x384xbf16, #tpu.memory_space<vmem>>, vector<8x384xbf16>,
    %c0_88 = arith.constant 0 : index
    %c2 = arith.constant 2 : index
    %86 = vector.load %arg5[%c0_88, %c2] : memref<8x512xbf16, #tpu.memory_space<vmem>>, vector<8x384xbf16>
    %c16_89 = arith.constant 16 : index
    %c0_90 = arith.constant 0 : index
    %87 = vector.load %arg6[%c16_89, %c0_90] : memref<72x384xbf16, #tpu.memory_space<vmem>>, vector<8x384xbf16>
    tpu.vector_store %arg6[%c16_89, %c0_90], %86 {strides = array<i32>} : memref<72x384xbf16, #tpu.memory_space<vmem>>, vector<8x384xbf16>,
    %c0_91 = arith.constant 0 : index
    %c18 = arith.constant 18 : index
    %88 = vector.load %arg5[%c0_91, %c18] : memref<8x512xbf16, #tpu.memory_space<vmem>>, vector<8x384xbf16>
    %c24 = arith.constant 24 : index
    %c0_92 = arith.constant 0 : index
    %89 = vector.load %arg6[%c24, %c0_92] : memref<72x384xbf16, #tpu.memory_space<vmem>>, vector<8x384xbf16>
    tpu.vector_store %arg6[%c24, %c0_92], %88 {strides = array<i32>} : memref<72x384xbf16, #tpu.memory_space<vmem>>, vector<8x384xbf16>,
    %c0_93 = arith.constant 0 : index
    %c19_94 = arith.constant 19 : index
    %90 = vector.load %arg5[%c0_93, %c19_94] : memref<8x512xbf16, #tpu.memory_space<vmem>>, vector<8x384xbf16>
    %c32_95 = arith.constant 32 : index
    %c0_96 = arith.constant 0 : index
    %91 = vector.load %arg6[%c32_95, %c0_96] : memref<72x384xbf16, #tpu.memory_space<vmem>>, vector<8x384xbf16>
    tpu.vector_store %arg6[%c32_95, %c0_96], %90 {strides = array<i32>} : memref<72x384xbf16, #tpu.memory_space<vmem>>, vector<8x384xbf16>,
    %c0_97 = arith.constant 0 : index
    %c20 = arith.constant 20 : index
    %92 = vector.load %arg5[%c0_97, %c20] : memref<8x512xbf16, #tpu.memory_space<vmem>>, vector<8x384xbf16>
    %c40 = arith.constant 40 : index
    %c0_98 = arith.constant 0 : index
    %93 = vector.load %arg6[%c40, %c0_98] : memref<72x384xbf16, #tpu.memory_space<vmem>>, vector<8x384xbf16>
    tpu.vector_store %arg6[%c40, %c0_98], %92 {strides = array<i32>} : memref<72x384xbf16, #tpu.memory_space<vmem>>, vector<8x384xbf16>,
    %c0_99 = arith.constant 0 : index
    %c36 = arith.constant 36 : index
    %94 = vector.load %arg5[%c0_99, %c36] : memref<8x512xbf16, #tpu.memory_space<vmem>>, vector<8x384xbf16>
    %c48_100 = arith.constant 48 : index
    %c0_101 = arith.constant 0 : index
    %95 = vector.load %arg6[%c48_100, %c0_101] : memref<72x384xbf16, #tpu.memory_space<vmem>>, vector<8x384xbf16>
    tpu.vector_store %arg6[%c48_100, %c0_101], %94 {strides = array<i32>} : memref<72x384xbf16, #tpu.memory_space<vmem>>, vector<8x384xbf16>,
    %c0_102 = arith.constant 0 : index
    %c37_103 = arith.constant 37 : index
    %96 = vector.load %arg5[%c0_102, %c37_103] : memref<8x512xbf16, #tpu.memory_space<vmem>>, vector<8x384xbf16>
    %c56 = arith.constant 56 : index
    %c0_104 = arith.constant 0 : index
    %97 = vector.load %arg6[%c56, %c0_104] : memref<72x384xbf16, #tpu.memory_space<vmem>>, vector<8x384xbf16>
    tpu.vector_store %arg6[%c56, %c0_104], %96 {strides = array<i32>} : memref<72x384xbf16, #tpu.memory_space<vmem>>, vector<8x384xbf16>,
    %c0_105 = arith.constant 0 : index
    %c38 = arith.constant 38 : index
    %98 = vector.load %arg5[%c0_105, %c38] : memref<8x512xbf16, #tpu.memory_space<vmem>>, vector<8x384xbf16>
    %c64_106 = arith.constant 64 : index
    %c0_107 = arith.constant 0 : index
    %99 = vector.load %arg6[%c64_106, %c0_107] : memref<72x384xbf16, #tpu.memory_space<vmem>>, vector<8x384xbf16>
    tpu.vector_store %arg6[%c64_106, %c0_107], %98 {strides = array<i32>} : memref<72x384xbf16, #tpu.memory_space<vmem>>, vector<8x384xbf16>,
    %c0_108 = arith.constant 0 : index
    %c0_109 = arith.constant 0 : index
    %100 = vector.load %arg2[%c0_108, %c0_109] : memref<8x72xbf16, #tpu.memory_space<vmem>>, vector<8x72xbf16>
    %c0_110 = arith.constant 0 : index
    %c0_111 = arith.constant 0 : index
    %101 = vector.load %arg6[%c0_110, %c0_111] : memref<72x384xbf16, #tpu.memory_space<vmem>>, vector<72x384xbf16>
    %cst_112 = arith.constant dense<0.000000e+00> : vector<8x384xf32>
    %102 = tpu.matmul %100, %101, %cst_112 {dimension_numbers = #tpu.dot_dimension_numbers<[1], [0], [0], [1], [0, 0, 1, 1], [], []>} : vector<8x72xbf16>, vector<72x384xbf16>, vector<8x384xf32> -> vector<8x384xf32>
    %c0_113 = arith.constant 0 : index
    %c0_114 = arith.constant 0 : index
    %103 = vector.load %arg3[%c0_113, %c0_114] : memref<8x1xf32, #tpu.memory_space<vmem>>, vector<8x1xf32>
    %104 = vector.extract_strided_slice %102 {offsets = [0, 0], sizes = [8, 16], strides = [1, 1]} : vector<8x384xf32> to vector<8x16xf32>
    %105 = vector.broadcast %103 : vector<8x1xf32> to vector<8x16xf32>
    %106 = arith.addf %104, %105 : vector<8x16xf32>
    %c0_115 = arith.constant 0 : index
    %c0_116 = arith.constant 0 : index
    %c0_117 = arith.constant 0 : index
    %107 = vector.load %arg4[%c0_115, %c0_116, %c0_117] : memref<1x8x256xf32, #tpu.memory_space<vmem>>, vector<1x8x16xf32>
    %108 = vector.shape_cast %107 : vector<1x8x16xf32> to vector<8x16xf32>
    %109 = vector.shape_cast %106 : vector<8x16xf32> to vector<1x8x16xf32>
    tpu.vector_store %arg4[%c0_115, %c0_116, %c0_117], %109 {strides = array<i32>} : memref<1x8x256xf32, #tpu.memory_space<vmem>>, vector<1x8x16xf32>,
    %110 = vector.extract_strided_slice %102 {offsets = [0, 18], sizes = [8, 16], strides = [1, 1]} : vector<8x384xf32> to vector<8x16xf32>
    %111 = vector.broadcast %103 : vector<8x1xf32> to vector<8x16xf32>
    %112 = arith.addf %110, %111 : vector<8x16xf32>
    %c0_118 = arith.constant 0 : index
    %c0_119 = arith.constant 0 : index
    %c16_120 = arith.constant 16 : index
    %113 = vector.load %arg4[%c0_118, %c0_119, %c16_120] : memref<1x8x256xf32, #tpu.memory_space<vmem>>, vector<1x8x16xf32>
    %114 = vector.shape_cast %113 : vector<1x8x16xf32> to vector<8x16xf32>
    %115 = vector.shape_cast %112 : vector<8x16xf32> to vector<1x8x16xf32>
    tpu.vector_store %arg4[%c0_118, %c0_119, %c16_120], %115 {strides = array<i32>} : memref<1x8x256xf32, #tpu.memory_space<vmem>>, vector<1x8x16xf32>,
    %116 = vector.extract_strided_slice %102 {offsets = [0, 36], sizes = [8, 16], strides = [1, 1]} : vector<8x384xf32> to vector<8x16xf32>
    %117 = vector.broadcast %103 : vector<8x1xf32> to vector<8x16xf32>
    %118 = arith.addf %116, %117 : vector<8x16xf32>
    %c0_121 = arith.constant 0 : index
    %c0_122 = arith.constant 0 : index
    %c32_123 = arith.constant 32 : index
    %119 = vector.load %arg4[%c0_121, %c0_122, %c32_123] : memref<1x8x256xf32, #tpu.memory_space<vmem>>, vector<1x8x16xf32>
    %120 = vector.shape_cast %119 : vector<1x8x16xf32> to vector<8x16xf32>
    %121 = vector.shape_cast %118 : vector<8x16xf32> to vector<1x8x16xf32>
    tpu.vector_store %arg4[%c0_121, %c0_122, %c32_123], %121 {strides = array<i32>} : memref<1x8x256xf32, #tpu.memory_space<vmem>>, vector<1x8x16xf32>,
    %122 = vector.extract_strided_slice %102 {offsets = [0, 54], sizes = [8, 16], strides = [1, 1]} : vector<8x384xf32> to vector<8x16xf32>
    %123 = vector.broadcast %103 : vector<8x1xf32> to vector<8x16xf32>
    %124 = arith.addf %122, %123 : vector<8x16xf32>
    %c0_124 = arith.constant 0 : index
    %c0_125 = arith.constant 0 : index
    %c48_126 = arith.constant 48 : index
    %125 = vector.load %arg4[%c0_124, %c0_125, %c48_126] : memref<1x8x256xf32, #tpu.memory_space<vmem>>, vector<1x8x16xf32>
    %126 = vector.shape_cast %125 : vector<1x8x16xf32> to vector<8x16xf32>
    %127 = vector.shape_cast %124 : vector<8x16xf32> to vector<1x8x16xf32>
    tpu.vector_store %arg4[%c0_124, %c0_125, %c48_126], %127 {strides = array<i32>} : memref<1x8x256xf32, #tpu.memory_space<vmem>>, vector<1x8x16xf32>,
    %128 = vector.extract_strided_slice %102 {offsets = [0, 72], sizes = [8, 16], strides = [1, 1]} : vector<8x384xf32> to vector<8x16xf32>
    %129 = vector.broadcast %103 : vector<8x1xf32> to vector<8x16xf32>
    %130 = arith.addf %128, %129 : vector<8x16xf32>
    %c0_127 = arith.constant 0 : index
    %c0_128 = arith.constant 0 : index
    %c64_129 = arith.constant 64 : index
    %131 = vector.load %arg4[%c0_127, %c0_128, %c64_129] : memref<1x8x256xf32, #tpu.memory_space<vmem>>, vector<1x8x16xf32>
    %132 = vector.shape_cast %131 : vector<1x8x16xf32> to vector<8x16xf32>
    %133 = vector.shape_cast %130 : vector<8x16xf32> to vector<1x8x16xf32>
    tpu.vector_store %arg4[%c0_127, %c0_128, %c64_129], %133 {strides = array<i32>} : memref<1x8x256xf32, #tpu.memory_space<vmem>>, vector<1x8x16xf32>,
    %134 = vector.extract_strided_slice %102 {offsets = [0, 90], sizes = [8, 16], strides = [1, 1]} : vector<8x384xf32> to vector<8x16xf32>
    %135 = vector.broadcast %103 : vector<8x1xf32> to vector<8x16xf32>
    %136 = arith.addf %134, %135 : vector<8x16xf32>
    %c0_130 = arith.constant 0 : index
    %c0_131 = arith.constant 0 : index
    %c80_132 = arith.constant 80 : index
    %137 = vector.load %arg4[%c0_130, %c0_131, %c80_132] : memref<1x8x256xf32, #tpu.memory_space<vmem>>, vector<1x8x16xf32>
    %138 = vector.shape_cast %137 : vector<1x8x16xf32> to vector<8x16xf32>
    %139 = vector.shape_cast %136 : vector<8x16xf32> to vector<1x8x16xf32>
    tpu.vector_store %arg4[%c0_130, %c0_131, %c80_132], %139 {strides = array<i32>} : memref<1x8x256xf32, #tpu.memory_space<vmem>>, vector<1x8x16xf32>,
    %140 = vector.extract_strided_slice %102 {offsets = [0, 108], sizes = [8, 16], strides = [1, 1]} : vector<8x384xf32> to vector<8x16xf32>
    %141 = vector.broadcast %103 : vector<8x1xf32> to vector<8x16xf32>
    %142 = arith.addf %140, %141 : vector<8x16xf32>
    %c0_133 = arith.constant 0 : index
    %c0_134 = arith.constant 0 : index
    %c96_135 = arith.constant 96 : index
    %143 = vector.load %arg4[%c0_133, %c0_134, %c96_135] : memref<1x8x256xf32, #tpu.memory_space<vmem>>, vector<1x8x16xf32>
    %144 = vector.shape_cast %143 : vector<1x8x16xf32> to vector<8x16xf32>
    %145 = vector.shape_cast %142 : vector<8x16xf32> to vector<1x8x16xf32>
    tpu.vector_store %arg4[%c0_133, %c0_134, %c96_135], %145 {strides = array<i32>} : memref<1x8x256xf32, #tpu.memory_space<vmem>>, vector<1x8x16xf32>,
    %146 = vector.extract_strided_slice %102 {offsets = [0, 126], sizes = [8, 16], strides = [1, 1]} : vector<8x384xf32> to vector<8x16xf32>
    %147 = vector.broadcast %103 : vector<8x1xf32> to vector<8x16xf32>
    %148 = arith.addf %146, %147 : vector<8x16xf32>
    %c0_136 = arith.constant 0 : index
    %c0_137 = arith.constant 0 : index
    %c112_138 = arith.constant 112 : index
    %149 = vector.load %arg4[%c0_136, %c0_137, %c112_138] : memref<1x8x256xf32, #tpu.memory_space<vmem>>, vector<1x8x16xf32>
    %150 = vector.shape_cast %149 : vector<1x8x16xf32> to vector<8x16xf32>
    %151 = vector.shape_cast %148 : vector<8x16xf32> to vector<1x8x16xf32>
    tpu.vector_store %arg4[%c0_136, %c0_137, %c112_138], %151 {strides = array<i32>} : memref<1x8x256xf32, #tpu.memory_space<vmem>>, vector<1x8x16xf32>,
    %152 = vector.extract_strided_slice %102 {offsets = [0, 144], sizes = [8, 16], strides = [1, 1]} : vector<8x384xf32> to vector<8x16xf32>
    %153 = vector.broadcast %103 : vector<8x1xf32> to vector<8x16xf32>
    %154 = arith.addf %152, %153 : vector<8x16xf32>
    %c0_139 = arith.constant 0 : index
    %c0_140 = arith.constant 0 : index
    %c128_141 = arith.constant 128 : index
    %155 = vector.load %arg4[%c0_139, %c0_140, %c128_141] : memref<1x8x256xf32, #tpu.memory_space<vmem>>, vector<1x8x16xf32>
    %156 = vector.shape_cast %155 : vector<1x8x16xf32> to vector<8x16xf32>
    %157 = vector.shape_cast %154 : vector<8x16xf32> to vector<1x8x16xf32>
    tpu.vector_store %arg4[%c0_139, %c0_140, %c128_141], %157 {strides = array<i32>} : memref<1x8x256xf32, #tpu.memory_space<vmem>>, vector<1x8x16xf32>,
    %158 = vector.extract_strided_slice %102 {offsets = [0, 162], sizes = [8, 16], strides = [1, 1]} : vector<8x384xf32> to vector<8x16xf32>
    %159 = vector.broadcast %103 : vector<8x1xf32> to vector<8x16xf32>
    %160 = arith.addf %158, %159 : vector<8x16xf32>
    %c0_142 = arith.constant 0 : index
    %c0_143 = arith.constant 0 : index
    %c144_144 = arith.constant 144 : index
    %161 = vector.load %arg4[%c0_142, %c0_143, %c144_144] : memref<1x8x256xf32, #tpu.memory_space<vmem>>, vector<1x8x16xf32>
    %162 = vector.shape_cast %161 : vector<1x8x16xf32> to vector<8x16xf32>
    %163 = vector.shape_cast %160 : vector<8x16xf32> to vector<1x8x16xf32>
    tpu.vector_store %arg4[%c0_142, %c0_143, %c144_144], %163 {strides = array<i32>} : memref<1x8x256xf32, #tpu.memory_space<vmem>>, vector<1x8x16xf32>,
    %164 = vector.extract_strided_slice %102 {offsets = [0, 180], sizes = [8, 16], strides = [1, 1]} : vector<8x384xf32> to vector<8x16xf32>
    %165 = vector.broadcast %103 : vector<8x1xf32> to vector<8x16xf32>
    %166 = arith.addf %164, %165 : vector<8x16xf32>
    %c0_145 = arith.constant 0 : index
    %c0_146 = arith.constant 0 : index
    %c160_147 = arith.constant 160 : index
    %167 = vector.load %arg4[%c0_145, %c0_146, %c160_147] : memref<1x8x256xf32, #tpu.memory_space<vmem>>, vector<1x8x16xf32>
    %168 = vector.shape_cast %167 : vector<1x8x16xf32> to vector<8x16xf32>
    %169 = vector.shape_cast %166 : vector<8x16xf32> to vector<1x8x16xf32>
    tpu.vector_store %arg4[%c0_145, %c0_146, %c160_147], %169 {strides = array<i32>} : memref<1x8x256xf32, #tpu.memory_space<vmem>>, vector<1x8x16xf32>,
    %170 = vector.extract_strided_slice %102 {offsets = [0, 198], sizes = [8, 16], strides = [1, 1]} : vector<8x384xf32> to vector<8x16xf32>
    %171 = vector.broadcast %103 : vector<8x1xf32> to vector<8x16xf32>
    %172 = arith.addf %170, %171 : vector<8x16xf32>
    %c0_148 = arith.constant 0 : index
    %c0_149 = arith.constant 0 : index
    %c176_150 = arith.constant 176 : index
    %173 = vector.load %arg4[%c0_148, %c0_149, %c176_150] : memref<1x8x256xf32, #tpu.memory_space<vmem>>, vector<1x8x16xf32>
    %174 = vector.shape_cast %173 : vector<1x8x16xf32> to vector<8x16xf32>
    %175 = vector.shape_cast %172 : vector<8x16xf32> to vector<1x8x16xf32>
    tpu.vector_store %arg4[%c0_148, %c0_149, %c176_150], %175 {strides = array<i32>} : memref<1x8x256xf32, #tpu.memory_space<vmem>>, vector<1x8x16xf32>,
    %176 = vector.extract_strided_slice %102 {offsets = [0, 216], sizes = [8, 16], strides = [1, 1]} : vector<8x384xf32> to vector<8x16xf32>
    %177 = vector.broadcast %103 : vector<8x1xf32> to vector<8x16xf32>
    %178 = arith.addf %176, %177 : vector<8x16xf32>
    %c0_151 = arith.constant 0 : index
    %c0_152 = arith.constant 0 : index
    %c192_153 = arith.constant 192 : index
    %179 = vector.load %arg4[%c0_151, %c0_152, %c192_153] : memref<1x8x256xf32, #tpu.memory_space<vmem>>, vector<1x8x16xf32>
    %180 = vector.shape_cast %179 : vector<1x8x16xf32> to vector<8x16xf32>
    %181 = vector.shape_cast %178 : vector<8x16xf32> to vector<1x8x16xf32>
    tpu.vector_store %arg4[%c0_151, %c0_152, %c192_153], %181 {strides = array<i32>} : memref<1x8x256xf32, #tpu.memory_space<vmem>>, vector<1x8x16xf32>,
    %182 = vector.extract_strided_slice %102 {offsets = [0, 234], sizes = [8, 16], strides = [1, 1]} : vector<8x384xf32> to vector<8x16xf32>
    %183 = vector.broadcast %103 : vector<8x1xf32> to vector<8x16xf32>
    %184 = arith.addf %182, %183 : vector<8x16xf32>
    %c0_154 = arith.constant 0 : index
    %c0_155 = arith.constant 0 : index
    %c208_156 = arith.constant 208 : index
    %185 = vector.load %arg4[%c0_154, %c0_155, %c208_156] : memref<1x8x256xf32, #tpu.memory_space<vmem>>, vector<1x8x16xf32>
    %186 = vector.shape_cast %185 : vector<1x8x16xf32> to vector<8x16xf32>
    %187 = vector.shape_cast %184 : vector<8x16xf32> to vector<1x8x16xf32>
    tpu.vector_store %arg4[%c0_154, %c0_155, %c208_156], %187 {strides = array<i32>} : memref<1x8x256xf32, #tpu.memory_space<vmem>>, vector<1x8x16xf32>,
    %188 = vector.extract_strided_slice %102 {offsets = [0, 252], sizes = [8, 16], strides = [1, 1]} : vector<8x384xf32> to vector<8x16xf32>
    %189 = vector.broadcast %103 : vector<8x1xf32> to vector<8x16xf32>
    %190 = arith.addf %188, %189 : vector<8x16xf32>
    %c0_157 = arith.constant 0 : index
    %c0_158 = arith.constant 0 : index
    %c224_159 = arith.constant 224 : index
    %191 = vector.load %arg4[%c0_157, %c0_158, %c224_159] : memref<1x8x256xf32, #tpu.memory_space<vmem>>, vector<1x8x16xf32>
    %192 = vector.shape_cast %191 : vector<1x8x16xf32> to vector<8x16xf32>
    %193 = vector.shape_cast %190 : vector<8x16xf32> to vector<1x8x16xf32>
    tpu.vector_store %arg4[%c0_157, %c0_158, %c224_159], %193 {strides = array<i32>} : memref<1x8x256xf32, #tpu.memory_space<vmem>>, vector<1x8x16xf32>,
    %194 = vector.extract_strided_slice %102 {offsets = [0, 270], sizes = [8, 16], strides = [1, 1]} : vector<8x384xf32> to vector<8x16xf32>
    %195 = vector.broadcast %103 : vector<8x1xf32> to vector<8x16xf32>
    %196 = arith.addf %194, %195 : vector<8x16xf32>
    %c0_160 = arith.constant 0 : index
    %c0_161 = arith.constant 0 : index
    %c240_162 = arith.constant 240 : index
    %197 = vector.load %arg4[%c0_160, %c0_161, %c240_162] : memref<1x8x256xf32, #tpu.memory_space<vmem>>, vector<1x8x16xf32>
    %198 = vector.shape_cast %197 : vector<1x8x16xf32> to vector<8x16xf32>
    %199 = vector.shape_cast %196 : vector<8x16xf32> to vector<1x8x16xf32>
    tpu.vector_store %arg4[%c0_160, %c0_161, %c240_162], %199 {strides = array<i32>} : memref<1x8x256xf32, #tpu.memory_space<vmem>>, vector<1x8x16xf32>,
    return
  }
  func.func @transform_0(%arg0: i32) -> (i32, i32, i32) {
    %c0_i32 = arith.constant 0 : i32
    %c0_i32_0 = arith.constant 0 : i32
    %c0_i32_1 = arith.constant 0 : i32
    return %arg0, %c0_i32, %c0_i32_0 : i32, i32, i32
  }
  func.func @transform_1(%arg0: i32) -> (i32, i32) {
    %c0_i32 = arith.constant 0 : i32
    %c0_i32_0 = arith.constant 0 : i32
    %c0_i32_1 = arith.constant 0 : i32
    return %c0_i32, %c0_i32_0 : i32, i32
  }
  func.func @transform_2(%arg0: i32) -> (i32, i32) {
    %c0_i32 = arith.constant 0 : i32
    %c0_i32_0 = arith.constant 0 : i32
    %c0_i32_1 = arith.constant 0 : i32
    return %c0_i32, %c0_i32_0 : i32, i32
  }
  func.func @transform_3(%arg0: i32) -> (i32, i32, i32) {
    %c0_i32 = arith.constant 0 : i32
    %c0_i32_0 = arith.constant 0 : i32
    %c0_i32_1 = arith.constant 0 : i32
    return %arg0, %c0_i32, %c0_i32_0 : i32, i32, i32
  }
}

</mosaic_0001>

<bundles_post_ra>
// kernel: tpu_custom_call.1
= control target key start
LH: loop header
LB: loop body
LE: loop exit
PB: predicated region body
PF: predicated region fallthrough
CT: control target
= control target key end

     0   :  { %8 = vsyncpa [#allocation5], 0  ;;  %s1404_s0 = inlined_call_operand.hbm [shape: bf16[2,8,256], index: 0, kind: input, shape index: {}]   ;;  %s1405_s1 = inlined_call_operand.vmem [shape: bf16[8,72], index: 1, kind: input, shape index: {}]   ;;  %s1406_s2 = inlined_call_operand.vmem [shape: f32[8,1], index: 2, kind: input, shape index: {}]   ;;  %s1407_s3 = inlined_call_operand.hbm [shape: f32[2,8,256], index: 3, kind: output, shape index: {}]  }
   0x1   :  { %10 = vsyncpa [#allocation5 + $0x1], 0 }
   0x2   :  { %11 = vsyncpa [#allocation6], 0 }
   0x3   :  { %13 = vsyncpa [#allocation6 + $0x1], 0  ;;  %s1155_s12 = smov 0   ;;  %s1157_s13 = smov 0  }
   0x4   :  { %s1159_s14 = smov 0   ;;  %s1161_s15 = smov 0  }
   0x5 LB: > { %s1176_s16 = sadd.s32 4294967295, %s1092_s15   ;;  %s855_s17 = sadd.s32 4294967294, %s1092_s15   ;;  %s1092_s15 = sphi %s1161_s15, %s1424_s15   ;;  %s1088_s14 = sphi %s1159_s14, %s1423_s14   ;;  %s1084_s13 = sphi %s1157_s13, %s1422_s13   ;;  %s1080_s12 = sphi %s1155_s12, %s1421_s12  }
   0x6   : > { %s1180_s18 = sadd.s32 1, %s1092_s15   ;;  %s26_s19 = sadd.s32 1, %s1088_s14 }
   0x7   : > { %s23_s20 = ssub.s32 %s1092_s15, %s1180_s18  ;;  %p33_p0 = scmp.ne.s32.totalorder %s1088_s14, %s1084_s13 }
   0x8   : > { %p24_p1 = scmp.eq.s32.totalorder %s23_s20, 0  ;;  %p34_p2 = scmp.eq.s32.totalorder %s1092_s15, 0 }
   0x9   : > { %p39_p3 = scmp.ne.s32.totalorder %s1084_s13, %s1080_s12  ;;  %p40_p4 = scmp.eq.s32.totalorder %s1176_s16, 0 }
   0xa   : > { %s1192_s21 = scalar_select %p24_p1, %s1088_s14, %s26_s19  }
   0xb   : > { %p1194_p5 = por %p34_p2, %p33_p0  ;;  %p1198_p6 = por %p40_p4, %p39_p3 }
   0xc   : > { %p105_p7 = scmp.eq.s32.totalorder %s1176_s16, 1  ;;  %p111_p8 = scmp.eq.s32.totalorder %s855_s17, 1 }
   0xd   : > { %s1411_s23 = scalar_select %p1198_p6, 1, 0 }
   0xe   : > { %p921_p10 = scmp.lt.s32.totalorder %s1092_s15, 2  ;;  %p1205_p11 = por %p105_p7, %p33_p0 }
   0xf   : > { %p1209_p12 = por %p111_p8, %p39_p3  ;;  %s137_s26 = sand.u32 1, %s1088_s14  }
  0x10   : > { %s1412_s24 = scalar_select %p1205_p11, 1, 0 }
  0x11   : > { %s1413_s25 = scalar_select %p1209_p12, 1, 0 }
  0x12   : > { %s887_s27 = sshll.u32 %s1092_s15, 7  ;;  %s858_s28 = sshll.u32 %s137_s26, 3 }
  0x13   : > { %s1218_s4 = scalar_lea.hbm %s1404_s0, %s887_s27  ;;  %s141_s5 = scalar_lea.vmem [#allocation4], %s858_s28 }
  0x14   : > { %s149_s6 = sshll.u32 %s141_s5, 4  ;;  %p1222_p13 = pnand %p921_p10, %p1194_p5  ;;  %s1226_s6 = int_to_ptr.vmem [resolvable:$true] %s149_s6 }
  0x15   : > { %s138_s8 = scalar_lea.sflag [#allocation5], %s137_s26  ;;  %s1000_s9 = scalar_lea.hbm %s1218_s4, 128 }
  0x16   : > { %p1001_p2 = scmp.ne.s32.totalorder %s1218_s4, %s1000_s9  ;;  %p1002_p3 = pneg %p1222_p13 }
  0x17   : > { %s1005_s17 = scalar_lea.hbm %s1404_s0, 256  ;;  %p1006_p5 = scmp.lt.s32.totalorder %s1218_s4, %s1404_s0 }
  0x18   : > { %p1003_p4 = pnand %p1002_p3, %p1001_p2  ;;  %p1007_p8 = scmp.lt.s32.totalorder %s1005_s17, %s1000_s9 }
  0x1a   : > { %p1004_p7 = pneg %p1003_p4  ;;  %p1008_p10 = por %p1007_p8, %p1006_p5 }
  0x1c   : > { %p1009_p9 = pnand %p1008_p10, %p1004_p7 }
  0x1e   : > { %1012 = shalt.err (!%p1009_p9)
}
  0x1f   : > { %s1013_s22 = scalar_lea.vmem %s1226_s6, 128  ;;  %s1094_s26 = smov [#allocation4]  }
  0x20   : > { %p1014_p0 = scmp.ne.s32.totalorder %s1226_s6, %s1013_s22  ;;  %s1018_s27 = sshll.u32 %s1094_s26, 4  ;;  %s1019_s27 = int_to_ptr.vmem [resolvable:$false] %s1018_s27 }
  0x21   : > { %s1020_s28 = scalar_lea.vmem %s1019_s27, 256  ;;  %p1021_p4 = scmp.lt.s32.totalorder %s1226_s6, %s1019_s27 }
  0x22   : > { %p1016_p1 = pnand %p1014_p0, %p1002_p3  ;;  %p1022_p12 = scmp.lt.s32.totalorder %s1020_s28, %s1013_s22 }
  0x24   : > { %p1017_p2 = pneg %p1016_p1  ;;  %p1023_p11 = por %p1022_p12, %p1021_p4 }
  0x26   : > { %p1024_p6 = pnand %p1023_p11, %p1017_p2 }
  0x28   : > { %1027 = shalt.err (!%p1024_p6)
}
  0x29   : > { %916 = dma.hbm_to_vmem [thread:$0]  (!%p1222_p13), %s1218_s4, 128, %s1226_s6, %s138_s8  }
  0x2a   : > { %p1415_p9 = scmp.lt.s32.totalorder %s1092_s15, 3  ;;  %p1416_p7 = scmp.ge.s32.totalorder %s1092_s15, 1 }
  0x2c   : > { %p155_p0 = pnand %p1416_p7, %p1415_p9 }
  0x2d   : > { %s1253_s29 = sand.u32 (!%p155_p0), 1, %s1084_s13   ;;  %p1417_p6 = scmp.ne.s32.totalorder (!%p155_p0), %s1411_s23, 0 }
  0x2e   : > { %158 = sbr.rel (%p155_p0) target bundleno = 719 (0x2cf), region = 32  ;;  %s862_s30 = sshll.u32 (!%p155_p0), %s1253_s29, 3 }
  0x2f   : > { %s161_s5 = scalar_lea.sflag (!%p155_p0), [#allocation5], %s1253_s29  ;;  %s1257_s9 = scalar_lea.vmem (!%p155_p0), [#allocation4], %s862_s30 }
  0x33   : > { %1071 = dma.done.wait (%p1417_p6), %s161_s5, 128  }
  0x34   : > { %1073 = vsyncadd (%p1417_p6), %s161_s5, 4294967168  ;;  %vm188_vm0 = vcmask 150528   ;;  %vm190_vm1 = vcmask 298264   ;;  %vm192_vm2 = vcmask 445864   ;;  %vm194_vm3 = vcmask 593464   ;;  %s1096_s23 = smov 23  }
  0x35   : > { %v1095_v0 = vmov 0   ;;  %vm196_vm4 = vcmask 741064   ;;  %vm198_vm5 = vcmask 888664   ;;  %vm202_vm6 = vcmask 134264   ;;  %v238_v1 = vld [vmem:[%s1257_s9] sm:$0xf] }
  0x36   : > { %189 = vst.msk [vmem:[#allocation2] sm:$0xf] %vm188_vm0, %v1095_v0  ;;  %632 = vmatprep.mubr.bf16.mxu0 %v1095_v0  ;;  %994 = vset.pattern.permute.xlu0 %v1095_v0  ;;  %vm200_vm7 = vcmask 1036264   ;;  %vm204_vm8 = vcmask 281864   ;;  %vm206_vm9 = vcmask 429464   ;;  %vm208_vm10 = vcmask 577064  }
  0x37   : > { %191 = vst.msk [vmem:[#allocation2] sm:$0xf] %vm190_vm1, %v1095_v0  ;;  %vm210_vm11 = vcmask 724664   ;;  %vm212_vm12 = vcmask 872264   ;;  %v224_v2 = vld [vmem:[%s1257_s9] sm:$0xf]  ;;  %240 = vrot.lane.b32.xlu1 %v238_v1, %s1096_s23 }
  0x38   : > { %193 = vst.msk [vmem:[#allocation2] sm:$0xf] %vm192_vm2, %v1095_v0  ;;  %vm214_vm13 = vcmask 1019864   ;;  %s1097_s4 = smov 19   ;;  %v245_v3 = vld [vmem:[%s1257_s9] sm:$0xf] }
  0x39   : > { %195 = vst.msk [vmem:[#allocation2] sm:$0xf] %vm194_vm3, %v1095_v0  ;;  %226 = vrot.lane.b32.xlu0 %v224_v2, %s1097_s4  ;;  %v231_v4 = vld [vmem:[%s1257_s9] sm:$0xf]  ;;  %s1098_s6 = smov 25   ;;  %s1099_s7 = smov 21  }
  0x3a   : > { %203 = vst.msk [vmem:[#allocation2 + $0x4] sm:$0xf] %vm202_vm6, %v1095_v0  ;;  %v252_v5 = vld [vmem:[%s1257_s9] sm:$0xf]  ;;  %s1100_s8 = smov 27   ;;  %s1101_s10 = smov 31  }
  0x3b   : > { %197 = vst.msk [vmem:[#allocation2] sm:$0xf] %vm196_vm4, %v1095_v0  ;;  %247 = vrot.lane.b32.xlu1 %v245_v3, %s1098_s6  ;;  %v266_v6 = vld [vmem:[%s1257_s9] sm:$0xf]  ;;  %vm216_vm14 = vcmask 117864   ;;  %vm218_vm15 = vcmask 265464  }
  0x3c   : > { %205 = vst.msk [vmem:[#allocation2 + $0x4] sm:$0xf] %vm204_vm8, %v1095_v0  ;;  %v278_v7 = vld [vmem:[%s1257_s9] sm:$0xf]  ;;  %vm220_vm0 = vcmask 1043848   ;;  %vm221_vm1 = vcmask 1047556  }
  0x3d   : > { %199 = vst.msk [vmem:[#allocation2] sm:$0xf] %vm198_vm5, %v1095_v0  ;;  %233 = vrot.lane.b32.xlu0 %v231_v4, %s1099_s7  ;;  %v259_v8 = vld [vmem:[%s1257_s9] sm:$0xf]  ;;  %vm222_vm2 = vmor %vm221_vm1, %vm220_vm0  ;;  %s1102_s11 = smov 33   ;;  %s1103_s17 = smov 29  }
  0x3e   : > { %207 = vst.msk [vmem:[#allocation2 + $0x4] sm:$0xf] %vm206_vm9, %v1095_v0  ;;  %v292_v9 = vld [vmem:[%s1257_s9 + $0x4] sm:$0xf]  ;;  %s1104_s19 = smov 37   ;;  %s1105_s20 = smov 35  }
  0x3f   : > { %201 = vst.msk [vmem:[#allocation2] sm:$0xf] %vm200_vm7, %v1095_v0  ;;  %254 = vrot.lane.b32.xlu1 %v252_v5, %s1100_s8  ;;  %v285_v10 = vld [vmem:[%s1257_s9 + $0x4] sm:$0xf]  ;;  %s1106_s22 = smov 45   ;;  %s1107_s26 = smov 39  }
  0x40   : > { %209 = vst.msk [vmem:[#allocation2 + $0x4] sm:$0xf] %vm208_vm10, %v1095_v0  ;;  %v320_v11 = vld [vmem:[%s1257_s9 + $0x4] sm:$0xf]  ;;  %s1108_s27 = smov 41   ;;  %s1109_s28 = smov 43  }
  0x41   : > { %211 = vst.msk [vmem:[#allocation2 + $0x4] sm:$0xf] %vm210_vm11, %v1095_v0  ;;  %268 = vrot.lane.b32.xlu0 %v266_v6, %s1101_s10  ;;  %v299_v12 = vld [vmem:[%s1257_s9 + $0x4] sm:$0xf]  ;;  %s1110_s30 = smov 47   ;;  %s1111_s5 = smov 49  }
  0x42   : > { %213 = vst.msk [vmem:[#allocation2 + $0x4] sm:$0xf] %vm212_vm12, %v1095_v0  ;;  %v306_v13 = vld [vmem:[%s1257_s9 + $0x4] sm:$0xf]  ;;  %vm229_vm3 = vcmask 281752   ;;  %vm236_vm4 = vcmask 429352  }
  0x43   : > { %215 = vst.msk [vmem:[#allocation2 + $0x4] sm:$0xf] %vm214_vm13, %v1095_v0  ;;  %280 = vrot.lane.b32.xlu1 %v278_v7, %s1102_s11  ;;  %v313_v14 = vld [vmem:[%s1257_s9 + $0x4] sm:$0xf]  ;;  %vm243_vm5 = vcmask 576952   ;;  %vm250_vm6 = vcmask 724552  }
  0x44   : > { %217 = vst.msk [vmem:[#allocation2 + $0x8] sm:$0xf] %vm216_vm14, %v1095_v0  ;;  %v332_v15 = vld [vmem:[%s1257_s9 + $0x4] sm:$0xf]  ;;  %vm257_vm7 = vcmask 872152   ;;  %vm274_vm8 = vcmask 1044472  }
  0x45   : > { %219 = vst.msk [vmem:[#allocation2 + $0x8] sm:$0xf] %vm218_vm15, %v1095_v0  ;;  %261 = vrot.lane.b32.xlu0 %v259_v8, %s1103_s17  ;;  %v339_v16 = vld [vmem:[%s1257_s9 + $0x4] sm:$0xf]  ;;  %vm275_vm9 = vcmask 121860   ;;  %vm271_vm10 = vcmask 252928  }
  0x46   : > { %223 = vst.msk [vmem:[#allocation2 + $0x8] sm:$0xff] %vm222_vm2, %v1095_v0  ;;  %vm264_vm11 = vcmask 1019752   ;;  %vm276_vm12 = vmor %vm275_vm9, %vm274_vm8  ;;  %vm283_vm13 = vcmask 265352   ;;  %vm290_vm14 = vcmask 412952   ;;  %vm297_vm15 = vcmask 560552   ;;  %s1112_s9 = smov 90  }
  0x47   : > { %294 = vrot.lane.b32.xlu1 %v292_v9, %s1104_s19  ;;  %vm304_vm0 = vcmask 708152   ;;  %vm328_vm1 = vcmask 1044456   ;;  %vm329_vm2 = vcmask 105476   ;;  %vm344_vm8 = vcmask 396552   ;;  %s1114_s23 = smov 92   ;;  %s1115_s4 = smov 91  }
  0x48   : > { %v1113_v40 = vmov 0.0   ;;  %s1116_s6 = smov 109   ;;  %s1117_s7 = smov 108   ;;  %vm1121_vm9 = vmmov 0   ;;  %v681_v41 = vld [vmem:[%s1406_s2] sm:$0xff] }
  0x49   : > { %287 = vrot.lane.b32.xlu0 %v285_v10, %s1105_s20  ;;  %895 = vmatprep.subr.bf16.mxu1 %v1113_v40  ;;  %s1118_s8 = smov 126   ;;  %s1119_s10 = smov 110  }
  0x4a   : > { %s1120_s11 = smov 127   ;;  %905 = vmatprep.mubr.msk.bf16.mxu1 %vm1121_vm9, %v1113_v40  ;;  %s1131_s17 = smov 104   ;;  %vm714_vm9 = vcmask 786048  }
  0x4b   : > { %322 = vrot.lane.b32.xlu1 %v320_v11, %s1106_s22  ;;  %s1132_s19 = smov 102   ;;  %p1418_p12 = scmp.ne.s32.totalorder %s1412_s24, 0 }
  0x4d   : > { %301 = vrot.lane.b32.xlu0 %v299_v12, %s1107_s26  ;;  %s863_s26 = sshll.u32 %s1253_s29, 4 }
  0x4f   : > { %315 = vrot.lane.b32.xlu1 %v313_v14, %s1109_s28  ;;  %s1122_s28 = smov 124  }
  0x51   : > { %308 = vrot.lane.b32.xlu0 %v306_v13, %s1108_s27  ;;  %s1322_s27 = scalar_lea.vmem [#allocation7], %s863_s26 }
  0x52   : > { %s785_s20 = sshll.u32 %s1322_s27, 4  ;;  %s1361_s20 = int_to_ptr.vmem [resolvable:$true] %s785_s20 }
  0x53   : > { %341 = vrot.lane.b32.xlu1 %v339_v16, %s1111_s5  ;;  %s1124_s5 = smov 122  }
  0x55   : > { %334 = vrot.lane.b32.xlu0 %v332_v15, %s1110_s30  ;;  %s1123_s30 = smov 100  }
  0xa9   : > { %v241_v17 = vpop.permute.xlu1 %240 }
  0xab   : > { %v227_v18 = vpop.permute.xlu0 %226 }
  0xac   : > { %230 = vst.msk [vmem:[#allocation2] sm:$0xf] %vm229_vm3, %v227_v18  ;;  %vm311_vm3 = vcmask 855752  }
  0xad   : > { %v248_v19 = vpop.permute.xlu1 %247 }
  0xaf   : > { %v234_v20 = vpop.permute.xlu0 %233 }
  0xb0   : > { %237 = vst.msk [vmem:[#allocation2] sm:$0xf] %vm236_vm4, %v234_v20  ;;  %vm325_vm4 = vcmask 367616  }
  0xb1   : > { %244 = vst.msk [vmem:[#allocation2] sm:$0xf] %vm243_vm5, %v241_v17  ;;  %v255_v21 = vpop.permute.xlu1 %254  ;;  %vm318_vm5 = vcmask 1003352  }
  0xb2   : > { %251 = vst.msk [vmem:[#allocation2] sm:$0xf] %vm250_vm6, %v248_v19  ;;  %vm330_vm6 = vmor %vm329_vm2, %vm328_vm1  ;;  %vm398_vm1 = vcmask 900096   ;;  %vm362_vm2 = vcmask 1039360  }
  0xb3   : > { %v269_v22 = vpop.permute.xlu0 %268  ;;  %258 = vst.msk [vmem:[#allocation2] sm:$0xf] %vm257_vm7, %v255_v21  ;;  %vm337_vm7 = vcmask 248952  }
  0xb4   : > { %v270_v23 = vrot.slane %v269_v22, 4 }
  0xb5   : > { %v281_v24 = vpop.permute.xlu1 %280 }
  0xb6   : > { %v272_v26 = vsel %vm271_vm10, %v270_v23, %v269_v22  ;;  %vm360_vm10 = vcmask 1043456  }
  0xb7   : > { %v262_v25 = vpop.permute.xlu0 %261 }
  0xb8   : > { %265 = vst.msk [vmem:[#allocation2] sm:$0xf] %vm264_vm11, %v262_v25  ;;  %vm488_vm11 = vcmask 736256  }
  0xb9   : > { %277 = vst.msk [vmem:[#allocation2] sm:$0xff] %vm276_vm12, %v272_v26  ;;  %v295_v27 = vpop.permute.xlu1 %294  ;;  %vm452_vm12 = vcmask 752640  }
  0xba   : > { %284 = vst.msk [vmem:[#allocation2 + $0x4] sm:$0xf] %vm283_vm13, %v281_v24  ;;  %vm470_vm13 = vcmask 744448  }
  0xbb   : > { %v288_v28 = vpop.permute.xlu0 %287 }
  0xbc   : > { %291 = vst.msk [vmem:[#allocation2 + $0x4] sm:$0xf] %vm290_vm14, %v288_v28  ;;  %vm416_vm14 = vcmask 891904  }
  0xbd   : > { %298 = vst.msk [vmem:[#allocation2 + $0x4] sm:$0xf] %vm297_vm15, %v295_v27  ;;  %v323_v29 = vpop.permute.xlu1 %322  ;;  %vm434_vm15 = vcmask 883712  }
  0xbe   : > { %v324_v31 = vrot.slane %v323_v29, 4 }
  0xbf   : > { %v302_v30 = vpop.permute.xlu0 %301 }
  0xc0   : > { %305 = vst.msk [vmem:[#allocation2 + $0x4] sm:$0xf] %vm304_vm0, %v302_v30  ;;  %v326_v34 = vsel %vm325_vm4, %v324_v31, %v323_v29  ;;  %vm380_vm0 = vcmask 1031168   ;;  %vm688_vm4 = vcmask 130048  }
  0xc1   : > { %v316_v33 = vpop.permute.xlu1 %315 }
  0xc3   : > { %v309_v32 = vpop.permute.xlu0 %308 }
  0xc4   : > { %312 = vst.msk [vmem:[#allocation2 + $0x4] sm:$0xf] %vm311_vm3, %v309_v32  ;;  %vm586_vm3 = vcmask 588800  }
  0xc5   : > { %319 = vst.msk [vmem:[#allocation2 + $0x4] sm:$0xf] %vm318_vm5, %v316_v33  ;;  %v342_v36 = vpop.permute.xlu1 %341  ;;  %vm694_vm5 = vcmask 261248  }
  0xc6   : > { %331 = vst.msk [vmem:[#allocation2 + $0x4] sm:$0xff] %vm330_vm6, %v326_v34  ;;  %vm699_vm6 = vcmask 392448  }
  0xc7   : > { %v335_v35 = vpop.permute.xlu0 %334 }
  0xc8   : > { %338 = vst.msk [vmem:[#allocation2 + $0x8] sm:$0xf] %vm337_vm7, %v335_v35  ;;  %vm704_vm7 = vcmask 523648  }
  0xc9   : > { %345 = vst.msk [vmem:[#allocation2 + $0x8] sm:$0xf] %vm344_vm8, %v342_v36  ;;  %vm709_vm8 = vcmask 654848  }
  0xcd   : > { %v1279_v37 = vld [vmem:[#allocation2] sm:$0xff] }
  0xce   : > { %481 = vrot.lane.b32.xlu0 %v1279_v37, %s1112_s9 }
  0xd0   : > { %v347_v38 = vld [vmem:[#allocation2 + $0x8] sm:$0xf] }
  0xd1   : > { %v478_v39 = vld [vmem:[#allocation2 + $0x8] sm:$0xff]  ;;  %349 = vst [vmem:[#allocation3 + $0x8] sm:$0xf] %v347_v38 }
  0xd2   : > { %483 = vrot.lane.b32.xlu1 %v478_v39, %s1112_s9  ;;  %445 = vrot.lane.b32.xlu0 %v1279_v37, %s1114_s23  ;;  %s1125_s9 = smov 114  }
  0xd6   : > { %447 = vrot.lane.b32.xlu1 %v478_v39, %s1114_s23  ;;  %463 = vrot.lane.b32.xlu0 %v1279_v37, %s1115_s4  ;;  %s1126_s23 = smov 120  }
  0xda   : > { %465 = vrot.lane.b32.xlu1 %v478_v39, %s1115_s4  ;;  %409 = vrot.lane.b32.xlu0 %v1279_v37, %s1116_s6  ;;  %s1127_s4 = smov 118  }
  0xde   : > { %411 = vrot.lane.b32.xlu1 %v478_v39, %s1116_s6  ;;  %427 = vrot.lane.b32.xlu0 %v1279_v37, %s1117_s7  ;;  %s1128_s6 = smov 116  }
  0xe2   : > { %429 = vrot.lane.b32.xlu1 %v478_v39, %s1117_s7  ;;  %373 = vrot.lane.b32.xlu0 %v1279_v37, %s1118_s8 }
  0xe6   : > { %375 = vrot.lane.b32.xlu1 %v478_v39, %s1118_s8  ;;  %391 = vrot.lane.b32.xlu0 %v1279_v37, %s1119_s10 }
  0xea   : > { %393 = vrot.lane.b32.xlu1 %v478_v39, %s1119_s10  ;;  %354 = vrot.lane.b32.xlu0 %v1279_v37, %s1120_s11 }
  0xee   : > { %356 = vrot.lane.b32.xlu1 %v478_v39, %s1120_s11  ;;  %684 = vperm.xlu0 %994, %v681_v41   ;;  %s1130_s11 = smov 112  }
 0x140   : > { %v482_v42 = vpop.permute.xlu0 %481 }
 0x141   : > { %v485_v44 = vrot.slane %v482_v42, 4 }
 0x144   : > { %v484_v43 = vpop.permute.xlu1 %483  ;;  %v446_v46 = vpop.permute.xlu0 %445 }
 0x145   : > { %v486_v45 = vrot.slane %v484_v43, 4  ;;  %v449_v51 = vrot.slane %v446_v46, 4 }
 0x147   : > { %v487_v47 = vsel %vm360_vm10, %v485_v44, %v486_v45  ;;  %v490_v48 = vsel %vm488_vm11, %v484_v43, %v486_v45 }
 0x148   : > { %v489_v49 = vsel %vm488_vm11, %v482_v42, %v487_v47  ;;  %494 = vst [vmem:[#allocation3 + $0x68] sm:$0xf] %v490_v48  ;;  %v448_v50 = vpop.permute.xlu1 %447  ;;  %v464_v53 = vpop.permute.xlu0 %463  ;;  %vm762_vm11 = vcmask 818176  }
 0x149   : > { %v450_v52 = vrot.slane %v448_v50, 4  ;;  %v877_v54 = vcombine.high %v489_v49, %v489_v49  ;;  %v876_v55 = vcombine.low %v489_v49, %v489_v49  ;;  %v467_v61 = vrot.slane %v464_v53, 4 }
 0x14b   : > { %v451_v56 = vsel %vm360_vm10, %v449_v51, %v450_v52  ;;  %v454_v57 = vsel %vm452_vm12, %v448_v50, %v450_v52  ;;  %879 = vmatprep.subr.msk.bf16.mxu0 %vm360_vm10, %v877_v54  ;;  %v592_v58 = vsel %vm360_vm10, %v876_v55, 0  ;;  %v495_v52 = vld [vmem:[%s1405_s1] sm:$0xf] }
 0x14c   : > { %v453_v59 = vsel %vm452_vm12, %v446_v46, %v451_v56  ;;  %458 = vst [vmem:[#allocation3 + $0x50] sm:$0xf] %v454_v57  ;;  %v466_v60 = vpop.permute.xlu1 %465  ;;  %607 = vmatpush1.bf16.msra.mxu0 %v592_v58  ;;  %v410_v63 = vpop.permute.xlu0 %409  ;;  %vm727_vm12 = vcmask 932864  }
 0x14d   : > { %v468_v62 = vrot.slane %v466_v60, 4  ;;  %v413_v4 = vrot.slane %v410_v63, 4 }
 0x14f   : > { %v469_v0 = vsel %vm360_vm10, %v467_v61, %v468_v62  ;;  %v472_v1 = vsel %vm470_vm13, %v466_v60, %v468_v62  ;;  %v995_v2 = vld [vmem:[#allocation3 + $0x68] ss:$0 sps:$4 sm:$0xff]  }
 0x150   : > { %v471_v3 = vsel %vm470_vm13, %v464_v53, %v469_v0  ;;  %476 = vst [vmem:[#allocation3 + $0x5c] sm:$0xf] %v472_v1  ;;  %v412_v5 = vpop.permute.xlu1 %411  ;;  %v428_v7 = vpop.permute.xlu0 %427  ;;  %v598_v8 = vsel %vm360_vm10, %v995_v2, 0  ;;  %vm730_vm13 = vcmask 1048448  }
 0x151   : > { %v414_v6 = vrot.slane %v412_v5, 4  ;;  %v874_v9 = vcombine.high %v453_v59, %v471_v3  ;;  %v873_v10 = vcombine.low %v453_v59, %v471_v3  ;;  %896 = vmatpush3.bf16.msra.mxu1 %v598_v8  ;;  %v431_v15 = vrot.slane %v428_v7, 4 }
 0x152   : > { %897 = vmatprep.subr.bf16.mxu1 %v1113_v40 }
 0x153   : > { %v415_v11 = vsel %vm360_vm10, %v413_v4, %v414_v6  ;;  %v418_v12 = vsel %vm416_vm14, %v412_v5, %v414_v6  ;;  %608 = vmatprep.subr.bf16.mxu0 %v874_v9 }
 0x154   : > { %v417_v13 = vsel %vm416_vm14, %v410_v63, %v415_v11  ;;  %422 = vst [vmem:[#allocation3 + $0x38] sm:$0xf] %v418_v12  ;;  %v430_v14 = vpop.permute.xlu1 %429  ;;  %609 = vmatpush1.bf16.msra.mxu0 %v873_v10  ;;  %v374_v17 = vpop.permute.xlu0 %373 }
 0x155   : > { %v432_v16 = vrot.slane %v430_v14, 4  ;;  %v377_v23 = vrot.slane %v374_v17, 4 }
 0x157   : > { %v433_v18 = vsel %vm360_vm10, %v431_v15, %v432_v16  ;;  %v436_v19 = vsel %vm434_vm15, %v430_v14, %v432_v16  ;;  %v996_v20 = vld [vmem:[#allocation3 + $0x50] ss:$12 sps:$4 sm:$0xff]  }
 0x158   : > { %v435_v21 = vsel %vm434_vm15, %v428_v7, %v433_v18  ;;  %440 = vst [vmem:[#allocation3 + $0x44] sm:$0xf] %v436_v19  ;;  %v376_v22 = vpop.permute.xlu1 %375  ;;  %v392_v25 = vpop.permute.xlu0 %391  ;;  %898 = vmatpush3.bf16.msra.mxu1 %v996_v20 }
 0x159   : > { %v378_v24 = vrot.slane %v376_v22, 4  ;;  %v871_v26 = vcombine.high %v417_v13, %v435_v21  ;;  %v870_v27 = vcombine.low %v417_v13, %v435_v21  ;;  %899 = vmatprep.subr.bf16.mxu1 %v1113_v40  ;;  %v395_v32 = vrot.slane %v392_v25, 4 }
 0x15b   : > { %v379_v28 = vsel %vm360_vm10, %v377_v23, %v378_v24  ;;  %v382_v29 = vsel %vm380_vm0, %v376_v22, %v378_v24  ;;  %610 = vmatprep.subr.bf16.mxu0 %v871_v26 }
 0x15c   : > { %v381_v30 = vsel %vm380_vm0, %v374_v17, %v379_v28  ;;  %386 = vst [vmem:[#allocation3 + $0x20] sm:$0xf] %v382_v29  ;;  %v394_v31 = vpop.permute.xlu1 %393  ;;  %611 = vmatpush1.bf16.msra.mxu0 %v870_v27  ;;  %v355_v34 = vpop.permute.xlu0 %354 }
 0x15d   : > { %v396_v33 = vrot.slane %v394_v31, 4  ;;  %v358_v42 = vrot.slane %v355_v34, 4 }
 0x15f   : > { %v397_v35 = vsel %vm360_vm10, %v395_v32, %v396_v33  ;;  %v400_v36 = vsel %vm398_vm1, %v394_v31, %v396_v33  ;;  %v997_v38 = vld [vmem:[#allocation3 + $0x38] ss:$12 sps:$4 sm:$0xff]  }
 0x160   : > { %v399_v39 = vsel %vm398_vm1, %v392_v25, %v397_v35  ;;  %404 = vst [vmem:[#allocation3 + $0x2c] sm:$0xf] %v400_v36  ;;  %v357_v41 = vpop.permute.xlu1 %356  ;;  %900 = vmatpush3.bf16.msra.mxu1 %v997_v38 }
 0x161   : > { %v359_v43 = vrot.slane %v357_v41, 4  ;;  %v868_v44 = vcombine.high %v381_v30, %v399_v39  ;;  %v867_v45 = vcombine.low %v381_v30, %v399_v39  ;;  %901 = vmatprep.subr.bf16.mxu1 %v1113_v40 }
 0x163   : > { %v361_v46 = vsel %vm360_vm10, %v358_v42, %v359_v43  ;;  %v364_v47 = vsel %vm362_vm2, %v357_v41, %v359_v43  ;;  %612 = vmatprep.subr.bf16.mxu0 %v868_v44  ;;  %vm719_vm10 = vcmask 917248  }
 0x164   : > { %v363_v48 = vsel %vm362_vm2, %v355_v34, %v361_v46  ;;  %368 = vst [vmem:[#allocation3 + $0x14] sm:$0xf] %v364_v47  ;;  %613 = vmatpush1.bf16.msra.mxu0 %v867_v45 }
 0x165   : > { %v865_v49 = vcombine.high %v1279_v37, %v363_v48  ;;  %v864_v50 = vcombine.low %v1279_v37, %v363_v48 }
 0x167   : > { %v998_v51 = vld [vmem:[#allocation3 + $0x20] ss:$12 sps:$4 sm:$0xff]   ;;  %614 = vmatprep.subr.bf16.mxu0 %v865_v49 }
 0x168   : > { %615 = vmatpush1.bf16.msra.mxu0 %v864_v50  ;;  %902 = vmatpush3.bf16.msra.mxu1 %v998_v51 }
 0x169   : > { %903 = vmatprep.subr.bf16.mxu1 %v1113_v40  ;;  %v685_v54 = vpop.permute.xlu0 %684 }
 0x16b   : > { %v999_v53 = vld [vmem:[#allocation3 + $0x8] ss:$12 sps:$4 sm:$0xff]   ;;  %880 = vmatmul.mubr.msk.bf16.vlgmr.msra.gmra.mxu0 %vm586_vm3, %v495_v52 }
 0x16c   : > { %904 = vmatpush3.bf16.msra.mxu1 %v999_v53 }
 0x16f   : > { %906 = vmatmul.mubr.msk.bf16.vlgmr.msra.gmra.mxu1 %vm586_vm3, %v495_v52 }
 0x22b   : > { %v634_v55 = vpop.f32.mrf.mxu0 }
 0x22c   : > { %v687_v37 = vadd.f32 %v685_v54, %v634_v55 }
 0x22d   : > { %v636_v56 = vpop.f32.mrf.mxu0 }
 0x22e   : > { %691 = vrot.lane.b32.xlu1 %v687_v37, %s1118_s8  ;;  %689 = vst.msk [vmem:[%s1322_s27] sm:$0xff] %vm688_vm4, %v687_v37  ;;  %v721_v63 = vadd.f32 %v685_v54, %v636_v56  ;;  %s1129_s8 = smov 106  }
 0x22f   : > { %v638_v57 = vpop.f32.mrf.mxu0  ;;  %v675_v58 = vpop.f32.mrf.mxu1 }
 0x230   : > { %v756_v40 = vadd.f32 %v685_v54, %v675_v58 }
 0x231   : > { %v639_v59 = vpop.f32.mrf.mxu0  ;;  %v907_v60 = vpop.f32.mrf.mxu1 }
 0x232   : > { %696 = vrot.lane.b32.xlu1 %v687_v37, %s1122_s28  ;;  %760 = vrot.lane.b32.xlu0 %v756_v40, %s1123_s30 }
 0x233   : > { %v678_v61 = vpop.f32.mrf.mxu1 }
 0x235   : > { %v908_v62 = vpop.f32.mrf.mxu1 }
 0x236   : > { %701 = vrot.lane.b32.xlu1 %v687_v37, %s1124_s5  ;;  %723 = vrot.lane.b32.xlu0 %v687_v37, %s1125_s9  ;;  %s1134_s5 = smov [#allocation7]  }
 0x23a   : > { %706 = vrot.lane.b32.xlu1 %v687_v37, %s1126_s23  ;;  %736 = vrot.lane.b32.xlu0 %v721_v63, %s1119_s10  ;;  %s1133_s10 = smov 98  }
 0x23e   : > { %711 = vrot.lane.b32.xlu1 %v687_v37, %s1127_s4  ;;  %740 = vrot.lane.b32.xlu0 %v721_v63, %s1117_s7  ;;  %s888_s7 = sshll.u32 %s1176_s16, 8  ;;  %s771_s16 = scalar_lea.sflag [#allocation6], %s1253_s29 }
 0x23f   : > { %s1359_s28 = scalar_lea.hbm %s1407_s3, %s888_s7 }
 0x242   : > { %716 = vrot.lane.b32.xlu1 %v687_v37, %s1128_s6  ;;  %744 = vrot.lane.b32.xlu0 %v721_v63, %s1129_s8 }
 0x246   : > { %732 = vrot.lane.b32.xlu1 %v721_v63, %s1130_s11  ;;  %748 = vrot.lane.b32.xlu0 %v721_v63, %s1131_s17 }
 0x24a   : > { %758 = vrot.lane.b32.xlu1 %v721_v63, %s1123_s30  ;;  %752 = vrot.lane.b32.xlu0 %v721_v63, %s1132_s19  ;;  %s1028_s30 = scalar_lea.vmem %s1361_s20, 256 }
 0x24b   : > { %p1029_p11 = scmp.ne.s32.totalorder %s1361_s20, %s1028_s30 }
 0x24d   : > { %p1030_p13 = pnand %p1029_p11, %p1418_p12 }
 0x24e   : > { %725 = vrot.lane.b32.xlu1 %v721_v63, %s1125_s9  ;;  %766 = vrot.lane.b32.xlu0 %v756_v40, %s1133_s10  ;;  %s1032_s9 = sshll.u32 %s1134_s5, 4  ;;  %s1033_s9 = int_to_ptr.vmem [resolvable:$false] %s1032_s9 }
 0x24f   : > { %p1031_p1 = pneg %p1030_p13  ;;  %s1034_s23 = scalar_lea.vmem %s1033_s9, 512 }
 0x250   : > { %p1035_p3 = scmp.lt.s32.totalorder %s1361_s20, %s1033_s9  ;;  %p1036_p5 = scmp.lt.s32.totalorder %s1034_s23, %s1028_s30 }
 0x252   : > { %p1037_p8 = por %p1036_p5, %p1035_p3 }
 0x254   : > { %p1038_p10 = pnand %p1037_p8, %p1031_p1 }
 0x2a0   : > { %v692_v0 = vpop.permute.xlu1 %691 }
 0x2a1   : > { %695 = vst.msk [vmem:[%s1322_s27] sm:$0xff] %vm694_vm5, %v692_v0 }
 0x2a4   : > { %v697_v1 = vpop.permute.xlu1 %696  ;;  %v761_v2 = vpop.permute.xlu0 %760 }
 0x2a5   : > { %700 = vst.msk [vmem:[%s1322_s27] sm:$0xff] %vm699_vm6, %v697_v1 }
 0x2a8   : > { %v702_v3 = vpop.permute.xlu1 %701  ;;  %v724_v4 = vpop.permute.xlu0 %723 }
 0x2a9   : > { %705 = vst.msk [vmem:[%s1322_s27] sm:$0xff] %vm704_vm7, %v702_v3 }
 0x2ac   : > { %v707_v5 = vpop.permute.xlu1 %706  ;;  %v737_v6 = vpop.permute.xlu0 %736 }
 0x2ad   : > { %710 = vst.msk [vmem:[%s1322_s27] sm:$0xff] %vm709_vm8, %v707_v5 }
 0x2b0   : > { %v712_v7 = vpop.permute.xlu1 %711  ;;  %v741_v8 = vpop.permute.xlu0 %740 }
 0x2b1   : > { %715 = vst.msk [vmem:[%s1322_s27] sm:$0xff] %vm714_vm9, %v712_v7 }
 0x2b4   : > { %v717_v9 = vpop.permute.xlu1 %716  ;;  %v745_v10 = vpop.permute.xlu0 %744 }
 0x2b5   : > { %720 = vst.msk [vmem:[%s1322_s27] sm:$0xff] %vm719_vm10, %v717_v9 }
 0x2b8   : > { %v733_v11 = vpop.permute.xlu1 %732  ;;  %v749_v12 = vpop.permute.xlu0 %748 }
 0x2b9   : > { %735 = vst.msk [vmem:[%s1322_s27 + $0x8] sm:$0xff] %vm688_vm4, %v733_v11 }
 0x2ba   : > { %739 = vst.msk [vmem:[%s1322_s27 + $0x8] sm:$0xff] %vm694_vm5, %v737_v6 }
 0x2bb   : > { %743 = vst.msk [vmem:[%s1322_s27 + $0x8] sm:$0xff] %vm699_vm6, %v741_v8 }
 0x2bc   : > { %747 = vst.msk [vmem:[%s1322_s27 + $0x8] sm:$0xff] %vm704_vm7, %v745_v10  ;;  %v759_v13 = vpop.permute.xlu1 %758  ;;  %v753_v14 = vpop.permute.xlu0 %752 }
 0x2bd   : > { %751 = vst.msk [vmem:[%s1322_s27 + $0x8] sm:$0xff] %vm709_vm8, %v749_v12  ;;  %v763_v15 = vsel %vm762_vm11, %v759_v13, %v761_v2 }
 0x2be   : > { %755 = vst.msk [vmem:[%s1322_s27 + $0x8] sm:$0xff] %vm714_vm9, %v753_v14 }
 0x2bf   : > { %765 = vst.msk [vmem:[%s1322_s27 + $0x8] sm:$0xff] %vm719_vm10, %v763_v15 }
 0x2c0   : > { %v726_v16 = vpop.permute.xlu1 %725  ;;  %v767_v17 = vpop.permute.xlu0 %766 }
 0x2c1   : > { %v728_v18 = vsel %vm727_vm12, %v724_v4, %v726_v16  ;;  %769 = vst.msk [vmem:[%s1322_s27 + $0x8] sm:$0xff] %vm730_vm13, %v767_v17 }
 0x2c2   : > { %731 = vst.msk [vmem:[%s1322_s27] sm:$0xff] %vm730_vm13, %v728_v18 }
 0x2c3   : > { %1041 = shalt.err (!%p1038_p10)
}
 0x2c4   : > { %s1042_s27 = scalar_lea.hbm %s1359_s28, 256  ;;  %s1046_s6 = scalar_lea.hbm %s1407_s3, 512 }
 0x2c5   : > { %p1043_p2 = scmp.ne.s32.totalorder %s1359_s28, %s1042_s27  ;;  %p1047_p7 = scmp.lt.s32.totalorder %s1359_s28, %s1407_s3 }
 0x2c6   : > { %p1048_p0 = scmp.lt.s32.totalorder %s1046_s6, %s1042_s27 }
 0x2c7   : > { %p1044_p4 = pnand %p1043_p2, %p1418_p12 }
 0x2c8   : > { %p1049_p6 = por %p1048_p0, %p1047_p7 }
 0x2c9   : > { %p1045_p9 = pneg %p1044_p4 }
 0x2cb   : > { %p1050_p11 = pnand %p1049_p6, %p1045_p9 }
 0x2cd   : > { %1053 = shalt.err (!%p1050_p11)
}
 0x2ce   : > { %911 = dma.vmem_to_hbm [thread:$0]  (%p1418_p12), %s1361_s20, 256, %s1359_s28, %s771_s16  }
 0x2cf PF: > { %s797_s17 = sand.u32 1, %s1080_s12   ;;  %p1419_p13 = scmp.ne.s32.totalorder %s1413_s25, 0 }
 0x2d0   : > { %p1420_p1 = scmp.ge.s32.totalorder %s1092_s15, 2  ;;  %s798_s19 = scalar_lea.sflag [#allocation6], %s797_s17 }
 0x2d2   : > { %p918_p3 = pnand %p1420_p1, %p1419_p13 }
 0x2d4   : > { %p919_p5 = pneg %p918_p3 }
 0x2d6   : > { %1075 = dma.done.wait (%p919_p5), %s798_s19, 256  }
 0x2d7   : > { %1077 = vsyncadd (%p919_p5), %s798_s19, 4294967040  ;;  %p16_p8 = scmp.ge.s32.totalorder %s1180_s18, 4   ;;  %s1421_s12 = smov %s1084_s13 }
 0x2d8   : > { %s1422_s13 = smov %s1088_s14  ;;  %s1423_s14 = smov %s1192_s21 }
 0x2d9   : > { %s1424_s15 = smov %s1180_s18  ;;  %18 = sbr.rel (!%p16_p8) target bundleno = 5 (0x5), region = 77 }
 0x2de   :  { %803 = vsyncpa [#allocation5], 1 }
 0x2df   :  { %805 = vsyncpa [#allocation5 + $0x1], 1 }
 0x2e0   :  { %806 = vsyncpa [#allocation6], 1 }
 0x2e1   :  { %808 = vsyncpa [#allocation6 + $0x1], 1 }

</bundles_post_ra>
